<compile_context>
chip_gen: v5e
topology: v5e:2x2
jax: 0.10.0
libtpu: 0.0.40
codegen_flags: <defaults>
</compile_context>

<pallas_src>
import jax
import jax.numpy as jnp
from jax.experimental import pallas as pl
from jax.experimental.pallas import tpu as pltpu

_IMG = 784  # 28 * 28


def _round_up(x, m):
    return ((x + m - 1) // m) * m


def _autoencoder_kernel(x_ref,
                        w1_ref, b1_ref,
                        w2_ref, b2_ref,
                        w34_ref, b4_ref,
                        w5_ref, b5_ref,
                        w6_ref, b6_ref,
                        out_ref):
    """Fused forward pass for one batch tile: 5 bf16 matmuls (f32 accum) + bias/ReLU."""
    x = x_ref[...].astype(jnp.bfloat16)                               # (bt, 784)

    # ---- encoder ----
    h = jnp.dot(x, w1_ref[...], preferred_element_type=jnp.float32) + b1_ref[...]
    h = jnp.maximum(h, 0.0).astype(jnp.bfloat16)                      # (bt, e1)

    h = jnp.dot(h, w2_ref[...], preferred_element_type=jnp.float32) + b2_ref[...]
    h = jnp.maximum(h, 0.0).astype(jnp.bfloat16)                      # (bt, e2)

    # ---- bottleneck (w3 @ w4 folded: no bias / activation between them) + decoder ----
    h = jnp.dot(h, w34_ref[...], preferred_element_type=jnp.float32) + b4_ref[...]
    h = jnp.maximum(h, 0.0).astype(jnp.bfloat16)                      # (bt, e2)

    h = jnp.dot(h, w5_ref[...], preferred_element_type=jnp.float32) + b5_ref[...]
    h = jnp.maximum(h, 0.0).astype(jnp.bfloat16)                      # (bt, e1)

    out = jnp.dot(h, w6_ref[...], preferred_element_type=jnp.float32) + b6_ref[...]
    out_ref[...] = out.astype(out_ref.dtype)                          # (bt, 784)


def prepare_params(params):
    """One-time weight prep: fold w3 @ w4 (no bias / activation between them in
    forward()), cast matmul operands to bf16, keep biases in f32.  Hoisted out of
    the forward call so repeated inference does not redo this work."""
    (w1, b1, w2, b2, w3, w4, b4, w5, b5, w6, b6) = params
    w34 = (w3.astype(jnp.float32) @ w4.astype(jnp.float32)).astype(jnp.bfloat16)
    return (
        w1.astype(jnp.bfloat16), b1.astype(jnp.float32),
        w2.astype(jnp.bfloat16), b2.astype(jnp.float32),
        w34, b4.astype(jnp.float32),
        w5.astype(jnp.bfloat16), b5.astype(jnp.float32),
        w6.astype(jnp.bfloat16), b6.astype(jnp.float32),
    )


def autoencoder_forward(x, prepared, *, batch_tile=1024):
    """x: (batch, 784) or (batch, 1, 28, 28) float32 -> (batch, 1, 28, 28) float32."""
    batch = x.shape[0]
    (w1, b1, w2, b2, w34, b4, w5, b5, w6, b6) = prepared
    e1 = w1.shape[1]
    e2 = w2.shape[1]

    # ---- batch tile / grid selection ----
    padded_batch = _round_up(batch, 8)
    bt = max(8, (min(batch_tile, padded_batch) // 8) * 8)
    if padded_batch >= 256 and bt >= 256:
        bt = (bt // 256) * 256        # fill the 256-row MXU M dim on v6e/v7x
    padded_batch = _round_up(batch, bt)
    grid = (padded_batch // bt,)

    # ---- input as (batch, 784) f32; pad batch rows only if the tile doesn't divide it ----
    x2d = x.reshape((batch, _IMG)).astype(jnp.float32)
    if padded_batch != batch:
        x2d = jnp.pad(x2d, ((0, padded_batch - batch), (0, 0)))

    # ---- cost estimate (advisory) ----
    weight_elems = _IMG * e1 + e1 * e2 + e2 * e2 + e2 * e1 + e1 * _IMG
    flops = 2 * padded_batch * weight_elems
    bytes_accessed = (padded_batch * _IMG * 4            # x (f32 in)
                      + padded_batch * _IMG * 4          # out (f32)
                      + weight_elems * 2                 # bf16 weights
                      + (e1 + e2 + e2 + e1 + _IMG) * 4)  # f32 biases
    cost = pl.CostEstimate(flops=flops, transcendentals=0,
                           bytes_accessed=bytes_accessed)

    # ---- footprint-based VMEM request (never the full 64 MiB of v7x) ----
    weight_bytes = sum(int(p.size) * p.dtype.itemsize for p in prepared)
    footprint = (2 * bt * _IMG * (4 + 4)          # double-buffered x + out tiles (f32)
                 + 2 * weight_bytes               # weights (default double-buffered)
                 + 3 * bt * max(e1, e2, _IMG) * 4)  # f32 intermediates headroom
    vmem_limit = None
    if footprint > (12 << 20):
        vmem_limit = min(int(footprint * 1.25), 48 << 20)

    def full(arr):
        return pl.BlockSpec(arr.shape, lambda i: (0, 0))

    out_p = pl.pallas_call(
        _autoencoder_kernel,
        out_shape=jax.ShapeDtypeStruct((padded_batch, _IMG), jnp.float32),
        grid_spec=pltpu.PrefetchScalarGridSpec(
            num_scalar_prefetch=0,
            grid=grid,
            in_specs=[
                pl.BlockSpec((bt, _IMG), lambda i: (i, 0)),   # x tile (full 784 last dim)
                full(w1), full(b1),
                full(w2), full(b2),
                full(w34), full(b4),
                full(w5), full(b5),
                full(w6), full(b6),
            ],
            out_specs=pl.BlockSpec((bt, _IMG), lambda i: (i, 0)),
        ),
        compiler_params=pltpu.CompilerParams(
            dimension_semantics=("parallel",),
            vmem_limit_bytes=vmem_limit,
        ),
        cost_estimate=cost,
    )(x2d, w1, b1, w2, b2, w34, b4, w5, b5, w6, b6)

    if padded_batch != batch:
        out_p = out_p[:batch]
    return out_p.reshape((batch, 1, 28, 28))


def init_params(key, *, hidden_size=32, encoder_size_1=256, encoder_size_2=128):
    """Deterministic synthetic weights. Linear(in, out) stored as W:(in,out), b:(1,out)."""
    assert hidden_size % 2 == 0
    dims = [
        (784, encoder_size_1, True),
        (encoder_size_1, encoder_size_2, True),
        (encoder_size_2, hidden_size, False),   # bias=False
        (hidden_size, encoder_size_2, True),
        (encoder_size_2, encoder_size_1, True),
        (encoder_size_1, 784, True),
    ]
    params = []
    for (fan_in, fan_out, has_bias) in dims:
        key, kw, kb = jax.random.split(key, 3)
        scale = 1.0 / jnp.sqrt(jnp.float32(fan_in))
        w = jax.random.uniform(kw, (fan_in, fan_out), jnp.float32, -scale, scale)
        params.append(w)
        if has_bias:
            b = jax.random.uniform(kb, (1, fan_out), jnp.float32, -scale, scale)
            params.append(b)
    return tuple(params)


def reference_forward(x, params):
    """Pure-JAX f32 reference matching PyTorch semantics (unfolded, unpadded)."""
    (w1, b1, w2, b2, w3, w4, b4, w5, b5, w6, b6) = params
    batch = x.shape[0]
    h = x.reshape((batch, 784)).astype(jnp.float32)
    h = jnp.maximum(h @ w1 + b1, 0.0)
    h = jnp.maximum(h @ w2 + b2, 0.0)
    z = h @ w3
    d = jnp.maximum(z @ w4 + b4, 0.0)
    d = jnp.maximum(d @ w5 + b5, 0.0)
    out = d @ w6 + b6
    return out.reshape((batch, 1, 28, 28))


if __name__ == "__main__":
    key = jax.random.PRNGKey(0)
    kp, kx = jax.random.split(key)

    # Small synthetic config: hidden=32, e1=256, e2=128; batch=16.
    params = init_params(kp, hidden_size=32, encoder_size_1=256, encoder_size_2=128)
    prepared = prepare_params(params)
    x = jax.random.normal(kx, (16, 784), jnp.float32)

    out = autoencoder_forward(x, prepared)
    out = jax.block_until_ready(out)

    ref = reference_forward(x, params)
    assert out.shape == (16, 1, 28, 28), out.shape
    # bf16 matmuls with f32 accumulation: relaxed tolerance vs f32 reference.
    assert jnp.allclose(out, ref, atol=2e-2, rtol=2e-2), "mismatch vs JAX reference"

    print("KERNEL_OK")
</pallas_src>

<mosaic_0001>
module attributes {stable_mosaic.version = 11 : i64} {
  func.func @_autoencoder_kernel(%arg0: i32, %arg1: memref<16x784xf32, #tpu.memory_space<vmem>>, %arg2: memref<784x256xbf16, #tpu.memory_space<vmem>>, %arg3: memref<1x256xf32, #tpu.memory_space<vmem>>, %arg4: memref<256x128xbf16, #tpu.memory_space<vmem>>, %arg5: memref<1x128xf32, #tpu.memory_space<vmem>>, %arg6: memref<128x128xbf16, #tpu.memory_space<vmem>>, %arg7: memref<1x128xf32, #tpu.memory_space<vmem>>, %arg8: memref<128x256xbf16, #tpu.memory_space<vmem>>, %arg9: memref<1x256xf32, #tpu.memory_space<vmem>>, %arg10: memref<256x784xbf16, #tpu.memory_space<vmem>>, %arg11: memref<1x784xf32, #tpu.memory_space<vmem>>, %arg12: memref<16x784xf32, #tpu.memory_space<vmem>>) attributes {dimension_semantics = [#tpu.dimension_semantics<parallel>], iteration_bounds = array<i64: 1>, scalar_prefetch = 0 : i64, scratch_operands = 0 : i64, tpu.core_type = #tpu.core_type<tc>, window_params = [{transform_indices = @transform_0, window_bounds = array<i64: 16, 784>}, {pipeline_mode = #tpu.pipeline_mode<synchronous>, transform_indices = @transform_1, window_bounds = array<i64: 784, 256>}, {pipeline_mode = #tpu.pipeline_mode<synchronous>, transform_indices = @transform_2, window_bounds = array<i64: 1, 256>}, {pipeline_mode = #tpu.pipeline_mode<synchronous>, transform_indices = @transform_3, window_bounds = array<i64: 256, 128>}, {pipeline_mode = #tpu.pipeline_mode<synchronous>, transform_indices = @transform_4, window_bounds = array<i64: 1, 128>}, {pipeline_mode = #tpu.pipeline_mode<synchronous>, transform_indices = @transform_5, window_bounds = array<i64: 128, 128>}, {pipeline_mode = #tpu.pipeline_mode<synchronous>, transform_indices = @transform_6, window_bounds = array<i64: 1, 128>}, {pipeline_mode = #tpu.pipeline_mode<synchronous>, transform_indices = @transform_7, window_bounds = array<i64: 128, 256>}, {pipeline_mode = #tpu.pipeline_mode<synchronous>, transform_indices = @transform_8, window_bounds = array<i64: 1, 256>}, {pipeline_mode = #tpu.pipeline_mode<synchronous>, transform_indices = @transform_9, window_bounds = array<i64: 256, 784>}, {pipeline_mode = #tpu.pipeline_mode<synchronous>, transform_indices = @transform_10, window_bounds = array<i64: 1, 784>}, {transform_indices = @transform_11, window_bounds = array<i64: 16, 784>}]} {
    %c0 = arith.constant 0 : index
    %c0_0 = arith.constant 0 : index
    %0 = vector.load %arg1[%c0, %c0_0] : memref<16x784xf32, #tpu.memory_space<vmem>>, vector<16x784xf32>
    %1 = arith.truncf %0 : vector<16x784xf32> to vector<16x784xbf16>
    %c0_1 = arith.constant 0 : index
    %c0_2 = arith.constant 0 : index
    %2 = vector.load %arg2[%c0_1, %c0_2] : memref<784x256xbf16, #tpu.memory_space<vmem>>, vector<784x256xbf16>
    %cst = arith.constant dense<0.000000e+00> : vector<16x256xf32>
    %3 = tpu.matmul %1, %2, %cst {dimension_numbers = #tpu.dot_dimension_numbers<[1], [0], [0], [1], [0, 0, 1, 1], [], []>} : vector<16x784xbf16>, vector<784x256xbf16>, vector<16x256xf32> -> vector<16x256xf32>
    %c0_3 = arith.constant 0 : index
    %c0_4 = arith.constant 0 : index
    %4 = vector.load %arg3[%c0_3, %c0_4] : memref<1x256xf32, #tpu.memory_space<vmem>>, vector<1x256xf32>
    %5 = vector.broadcast %4 : vector<1x256xf32> to vector<16x256xf32>
    %6 = arith.addf %3, %5 : vector<16x256xf32>
    %cst_5 = arith.constant 0.000000e+00 : f32
    %7 = vector.broadcast %cst_5 : f32 to vector<16x256xf32>
    %8 = arith.maximumf %6, %7 : vector<16x256xf32>
    %9 = arith.truncf %8 : vector<16x256xf32> to vector<16x256xbf16>
    %c0_6 = arith.constant 0 : index
    %c0_7 = arith.constant 0 : index
    %10 = vector.load %arg4[%c0_6, %c0_7] : memref<256x128xbf16, #tpu.memory_space<vmem>>, vector<256x128xbf16>
    %cst_8 = arith.constant dense<0.000000e+00> : vector<16x128xf32>
    %11 = tpu.matmul %9, %10, %cst_8 {dimension_numbers = #tpu.dot_dimension_numbers<[1], [0], [0], [1], [0, 0, 1, 1], [], []>} : vector<16x256xbf16>, vector<256x128xbf16>, vector<16x128xf32> -> vector<16x128xf32>
    %c0_9 = arith.constant 0 : index
    %c0_10 = arith.constant 0 : index
    %12 = vector.load %arg5[%c0_9, %c0_10] : memref<1x128xf32, #tpu.memory_space<vmem>>, vector<1x128xf32>
    %13 = vector.broadcast %12 : vector<1x128xf32> to vector<16x128xf32>
    %14 = arith.addf %11, %13 : vector<16x128xf32>
    %cst_11 = arith.constant 0.000000e+00 : f32
    %15 = vector.broadcast %cst_11 : f32 to vector<16x128xf32>
    %16 = arith.maximumf %14, %15 : vector<16x128xf32>
    %17 = arith.truncf %16 : vector<16x128xf32> to vector<16x128xbf16>
    %c0_12 = arith.constant 0 : index
    %c0_13 = arith.constant 0 : index
    %18 = vector.load %arg6[%c0_12, %c0_13] : memref<128x128xbf16, #tpu.memory_space<vmem>>, vector<128x128xbf16>
    %cst_14 = arith.constant dense<0.000000e+00> : vector<16x128xf32>
    %19 = tpu.matmul %17, %18, %cst_14 {dimension_numbers = #tpu.dot_dimension_numbers<[1], [0], [0], [1], [0, 0, 1, 1], [], []>} : vector<16x128xbf16>, vector<128x128xbf16>, vector<16x128xf32> -> vector<16x128xf32>
    %c0_15 = arith.constant 0 : index
    %c0_16 = arith.constant 0 : index
    %20 = vector.load %arg7[%c0_15, %c0_16] : memref<1x128xf32, #tpu.memory_space<vmem>>, vector<1x128xf32>
    %21 = vector.broadcast %20 : vector<1x128xf32> to vector<16x128xf32>
    %22 = arith.addf %19, %21 : vector<16x128xf32>
    %cst_17 = arith.constant 0.000000e+00 : f32
    %23 = vector.broadcast %cst_17 : f32 to vector<16x128xf32>
    %24 = arith.maximumf %22, %23 : vector<16x128xf32>
    %25 = arith.truncf %24 : vector<16x128xf32> to vector<16x128xbf16>
    %c0_18 = arith.constant 0 : index
    %c0_19 = arith.constant 0 : index
    %26 = vector.load %arg8[%c0_18, %c0_19] : memref<128x256xbf16, #tpu.memory_space<vmem>>, vector<128x256xbf16>
    %cst_20 = arith.constant dense<0.000000e+00> : vector<16x256xf32>
    %27 = tpu.matmul %25, %26, %cst_20 {dimension_numbers = #tpu.dot_dimension_numbers<[1], [0], [0], [1], [0, 0, 1, 1], [], []>} : vector<16x128xbf16>, vector<128x256xbf16>, vector<16x256xf32> -> vector<16x256xf32>
    %c0_21 = arith.constant 0 : index
    %c0_22 = arith.constant 0 : index
    %28 = vector.load %arg9[%c0_21, %c0_22] : memref<1x256xf32, #tpu.memory_space<vmem>>, vector<1x256xf32>
    %29 = vector.broadcast %28 : vector<1x256xf32> to vector<16x256xf32>
    %30 = arith.addf %27, %29 : vector<16x256xf32>
    %cst_23 = arith.constant 0.000000e+00 : f32
    %31 = vector.broadcast %cst_23 : f32 to vector<16x256xf32>
    %32 = arith.maximumf %30, %31 : vector<16x256xf32>
    %33 = arith.truncf %32 : vector<16x256xf32> to vector<16x256xbf16>
    %c0_24 = arith.constant 0 : index
    %c0_25 = arith.constant 0 : index
    %34 = vector.load %arg10[%c0_24, %c0_25] : memref<256x784xbf16, #tpu.memory_space<vmem>>, vector<256x784xbf16>
    %cst_26 = arith.constant dense<0.000000e+00> : vector<16x784xf32>
    %35 = tpu.matmul %33, %34, %cst_26 {dimension_numbers = #tpu.dot_dimension_numbers<[1], [0], [0], [1], [0, 0, 1, 1], [], []>} : vector<16x256xbf16>, vector<256x784xbf16>, vector<16x784xf32> -> vector<16x784xf32>
    %c0_27 = arith.constant 0 : index
    %c0_28 = arith.constant 0 : index
    %36 = vector.load %arg11[%c0_27, %c0_28] : memref<1x784xf32, #tpu.memory_space<vmem>>, vector<1x784xf32>
    %37 = vector.broadcast %36 : vector<1x784xf32> to vector<16x784xf32>
    %38 = arith.addf %35, %37 : vector<16x784xf32>
    %c0_29 = arith.constant 0 : index
    %c0_30 = arith.constant 0 : index
    %39 = vector.load %arg12[%c0_29, %c0_30] : memref<16x784xf32, #tpu.memory_space<vmem>>, vector<16x784xf32>
    tpu.vector_store %arg12[%c0_29, %c0_30], %38 {strides = array<i32>} : memref<16x784xf32, #tpu.memory_space<vmem>>, vector<16x784xf32>,
    return
  }
  func.func @transform_0(%arg0: i32) -> (i32, i32) {
    %c0_i32 = arith.constant 0 : i32
    %c0_i32_0 = arith.constant 0 : i32
    return %arg0, %c0_i32 : i32, i32
  }
  func.func @transform_1(%arg0: i32) -> (i32, i32) {
    %c0_i32 = arith.constant 0 : i32
    %c0_i32_0 = arith.constant 0 : i32
    %c0_i32_1 = arith.constant 0 : i32
    return %c0_i32, %c0_i32_0 : i32, i32
  }
  func.func @transform_2(%arg0: i32) -> (i32, i32) {
    %c0_i32 = arith.constant 0 : i32
    %c0_i32_0 = arith.constant 0 : i32
    %c0_i32_1 = arith.constant 0 : i32
    return %c0_i32, %c0_i32_0 : i32, i32
  }
  func.func @transform_3(%arg0: i32) -> (i32, i32) {
    %c0_i32 = arith.constant 0 : i32
    %c0_i32_0 = arith.constant 0 : i32
    %c0_i32_1 = arith.constant 0 : i32
    return %c0_i32, %c0_i32_0 : i32, i32
  }
  func.func @transform_4(%arg0: i32) -> (i32, i32) {
    %c0_i32 = arith.constant 0 : i32
    %c0_i32_0 = arith.constant 0 : i32
    %c0_i32_1 = arith.constant 0 : i32
    return %c0_i32, %c0_i32_0 : i32, i32
  }
  func.func @transform_5(%arg0: i32) -> (i32, i32) {
    %c0_i32 = arith.constant 0 : i32
    %c0_i32_0 = arith.constant 0 : i32
    %c0_i32_1 = arith.constant 0 : i32
    return %c0_i32, %c0_i32_0 : i32, i32
  }
  func.func @transform_6(%arg0: i32) -> (i32, i32) {
    %c0_i32 = arith.constant 0 : i32
    %c0_i32_0 = arith.constant 0 : i32
    %c0_i32_1 = arith.constant 0 : i32
    return %c0_i32, %c0_i32_0 : i32, i32
  }
  func.func @transform_7(%arg0: i32) -> (i32, i32) {
    %c0_i32 = arith.constant 0 : i32
    %c0_i32_0 = arith.constant 0 : i32
    %c0_i32_1 = arith.constant 0 : i32
    return %c0_i32, %c0_i32_0 : i32, i32
  }
  func.func @transform_8(%arg0: i32) -> (i32, i32) {
    %c0_i32 = arith.constant 0 : i32
    %c0_i32_0 = arith.constant 0 : i32
    %c0_i32_1 = arith.constant 0 : i32
    return %c0_i32, %c0_i32_0 : i32, i32
  }
  func.func @transform_9(%arg0: i32) -> (i32, i32) {
    %c0_i32 = arith.constant 0 : i32
    %c0_i32_0 = arith.constant 0 : i32
    %c0_i32_1 = arith.constant 0 : i32
    return %c0_i32, %c0_i32_0 : i32, i32
  }
  func.func @transform_10(%arg0: i32) -> (i32, i32) {
    %c0_i32 = arith.constant 0 : i32
    %c0_i32_0 = arith.constant 0 : i32
    %c0_i32_1 = arith.constant 0 : i32
    return %c0_i32, %c0_i32_0 : i32, i32
  }
  func.func @transform_11(%arg0: i32) -> (i32, i32) {
    %c0_i32 = arith.constant 0 : i32
    %c0_i32_0 = arith.constant 0 : i32
    return %arg0, %c0_i32 : i32, i32
  }
}

</mosaic_0001>

<bundles_post_ra>
// kernel: tpu_custom_call.1
= control target key start
LH: loop header
LB: loop body
LE: loop exit
PB: predicated region body
PF: predicated region fallthrough
CT: control target
= control target key end

     0   :  { %vm655_vm0 = vcmask 130048   ;;  %s5090_s0 = inlined_call_operand.vmem [shape: f32[16,784], index: 0, kind: input, shape index: {}]   ;;  %s5091_s1 = inlined_call_operand.vmem [shape: bf16[784,256], index: 1, kind: input, shape index: {}]   ;;  %s5092_s2 = inlined_call_operand.vmem [shape: f32[1,256], index: 2, kind: input, shape index: {}]   ;;  %s5093_s3 = inlined_call_operand.vmem [shape: bf16[256,128], index: 3, kind: input, shape index: {}]   ;;  %s5094_s4 = inlined_call_operand.vmem [shape: f32[1,128], index: 4, kind: input, shape index: {}]   ;;  %s5095_s5 = inlined_call_operand.vmem [shape: bf16[128,128], index: 5, kind: input, shape index: {}]   ;;  %s5096_s6 = inlined_call_operand.vmem [shape: f32[1,128], index: 6, kind: input, shape index: {}]   ;;  %s5097_s7 = inlined_call_operand.vmem [shape: bf16[128,256], index: 7, kind: input, shape index: {}]   ;;  %s5098_s8 = inlined_call_operand.vmem [shape: f32[1,256], index: 8, kind: input, shape index: {}]   ;;  %s5099_s9 = inlined_call_operand.vmem [shape: bf16[256,784], index: 9, kind: input, shape index: {}]   ;;  %s5100_s10 = inlined_call_operand.vmem [shape: f32[1,784], index: 10, kind: input, shape index: {}]   ;;  %s5101_s11 = inlined_call_operand.hbm [shape: f32[16,784], index: 11, kind: output, shape index: {}]  }
   0x1   :  { %v2251_v0 = vld [vmem:[%s5091_s1 + $0x70] sm:$0xf]  ;;  %v3210_v1 = vld [vmem:[%s5091_s1 + $0x74] sm:$0xf0]  ;;  %v2243_v11 = vld [vmem:[%s5091_s1 + $0x60] sm:$0xf] }
   0x2   :  { %v2379_v2 = vld [vmem:[%s5091_s1 + $0x170] sm:$0xf]  ;;  %v2252_v3 = vor.u32 %v3210_v1, %v2251_v0  ;;  %v3242_v4 = vld [vmem:[%s5091_s1 + $0x174] sm:$0xf0]  ;;  %v3208_v13 = vld [vmem:[%s5091_s1 + $0x64] sm:$0xf0] }
   0x3   :  { %v2443_v5 = vld [vmem:[%s5091_s1 + $0x1f0] sm:$0xf]  ;;  %v3258_v6 = vld [vmem:[%s5091_s1 + $0x1f4] sm:$0xf0]  ;;  %v2380_v7 = vor.u32 %v3242_v4, %v2379_v2  ;;  %v2371_v14 = vld [vmem:[%s5091_s1 + $0x160] sm:$0xf]  ;;  %v2244_v16 = vor.u32 %v3208_v13, %v2243_v11 }
   0x4   :  { %v2444_v8 = vor.u32 %v3258_v6, %v2443_v5  ;;  %v2315_v9 = vld [vmem:[%s5091_s1 + $0xf0] sm:$0xf]  ;;  %v3226_v10 = vld [vmem:[%s5091_s1 + $0xf4] sm:$0xf0]  ;;  %659 = vmatpush.bf16.msra.mxu0 %v2252_v3  ;;  %v3240_v15 = vld [vmem:[%s5091_s1 + $0x164] sm:$0xf0] }
   0x5   :  { %v2316_v12 = vor.u32 %v3226_v10, %v2315_v9  ;;  %687 = vmatpush.bf16.msra.mxu2 %v2380_v7  ;;  %v2372_v17 = vor.u32 %v3240_v15, %v2371_v14  ;;  %v2435_v18 = vld [vmem:[%s5091_s1 + $0x1e0] sm:$0xf]  ;;  %v3256_v19 = vld [vmem:[%s5091_s1 + $0x1e4] sm:$0xf0]  ;;  %v2235_v23 = vld [vmem:[%s5091_s1 + $0x50] sm:$0xf] }
   0x6   :  { %701 = vmatpush.bf16.msra.mxu3 %v2444_v8  ;;  %v2307_v20 = vld [vmem:[%s5091_s1 + $0xe0] sm:$0xf]  ;;  %v2436_v21 = vor.u32 %v3256_v19, %v2435_v18  ;;  %v3224_v22 = vld [vmem:[%s5091_s1 + $0xe4] sm:$0xf0]  ;;  %v3206_v24 = vld [vmem:[%s5091_s1 + $0x54] sm:$0xf0] }
   0x7   :  { %673 = vmatpush.bf16.msra.mxu1 %v2316_v12  ;;  %v2308_v25 = vor.u32 %v3224_v22, %v2307_v20  ;;  %v2363_v26 = vld [vmem:[%s5091_s1 + $0x150] sm:$0xf]  ;;  %v3238_v27 = vld [vmem:[%s5091_s1 + $0x154] sm:$0xf0]  ;;  %v2236_v29 = vor.u32 %v3206_v24, %v2235_v23  ;;  %v2227_v35 = vld [vmem:[%s5091_s1 + $0x40] sm:$0xf] }
   0x8   :  { %v2427_v28 = vld [vmem:[%s5091_s1 + $0x1d0] sm:$0xf]  ;;  %660 = vmatpush.bf16.msra.mxu0 %v2244_v16  ;;  %v3254_v30 = vld [vmem:[%s5091_s1 + $0x1d4] sm:$0xf0]  ;;  %v2364_v33 = vor.u32 %v3238_v27, %v2363_v26  ;;  %v3204_v36 = vld [vmem:[%s5091_s1 + $0x44] sm:$0xf0] }
   0x9   :  { %v2299_v31 = vld [vmem:[%s5091_s1 + $0xd0] sm:$0xf]  ;;  %v3222_v32 = vld [vmem:[%s5091_s1 + $0xd4] sm:$0xf0]  ;;  %688 = vmatpush.bf16.msra.mxu2 %v2372_v17  ;;  %v2428_v34 = vor.u32 %v3254_v30, %v2427_v28  ;;  %v2355_v37 = vld [vmem:[%s5091_s1 + $0x140] sm:$0xf]  ;;  %v2228_v44 = vor.u32 %v3204_v36, %v2227_v35 }
   0xa   :  { %702 = vmatpush.bf16.msra.mxu3 %v2436_v21  ;;  %v2300_v38 = vor.u32 %v3222_v32, %v2299_v31  ;;  %v3236_v39 = vld [vmem:[%s5091_s1 + $0x144] sm:$0xf0]  ;;  %v2419_v40 = vld [vmem:[%s5091_s1 + $0x1c0] sm:$0xf]  ;;  %v2219_v47 = vld [vmem:[%s5091_s1 + $0x30] sm:$0xf] }
   0xb   :  { %674 = vmatpush.bf16.msra.mxu1 %v2308_v25  ;;  %v3252_v41 = vld [vmem:[%s5091_s1 + $0x1c4] sm:$0xf0]  ;;  %v2291_v42 = vld [vmem:[%s5091_s1 + $0xc0] sm:$0xf]  ;;  %v2356_v45 = vor.u32 %v3236_v39, %v2355_v37  ;;  %v3202_v48 = vld [vmem:[%s5091_s1 + $0x34] sm:$0xf0] }
   0xc   :  { %v3220_v43 = vld [vmem:[%s5091_s1 + $0xc4] sm:$0xf0]  ;;  %661 = vmatpush.bf16.msra.mxu0 %v2236_v29  ;;  %v2420_v46 = vor.u32 %v3252_v41, %v2419_v40  ;;  %v2347_v49 = vld [vmem:[%s5091_s1 + $0x130] sm:$0xf]  ;;  %v3234_v51 = vld [vmem:[%s5091_s1 + $0x134] sm:$0xf0]  ;;  %v2220_v56 = vor.u32 %v3202_v48, %v2219_v47 }
   0xd   :  { %689 = vmatpush.bf16.msra.mxu2 %v2364_v33  ;;  %v2292_v50 = vor.u32 %v3220_v43, %v2291_v42  ;;  %v2411_v52 = vld [vmem:[%s5091_s1 + $0x1b0] sm:$0xf]  ;;  %v3250_v53 = vld [vmem:[%s5091_s1 + $0x1b4] sm:$0xf0]  ;;  %v2348_v57 = vor.u32 %v3234_v51, %v2347_v49  ;;  %v2211_v59 = vld [vmem:[%s5091_s1 + $0x20] sm:$0xf] }
   0xe   :  { %703 = vmatpush.bf16.msra.mxu3 %v2428_v34  ;;  %v2283_v54 = vld [vmem:[%s5091_s1 + $0xb0] sm:$0xf]  ;;  %v3218_v55 = vld [vmem:[%s5091_s1 + $0xb4] sm:$0xf0]  ;;  %v2412_v58 = vor.u32 %v3250_v53, %v2411_v52  ;;  %v3200_v60 = vld [vmem:[%s5091_s1 + $0x24] sm:$0xf0] }
   0xf   :  { %675 = vmatpush.bf16.msra.mxu1 %v2300_v38  ;;  %v2339_v61 = vld [vmem:[%s5091_s1 + $0x120] sm:$0xf]  ;;  %v2284_v62 = vor.u32 %v3218_v55, %v2283_v54  ;;  %v3232_v63 = vld [vmem:[%s5091_s1 + $0x124] sm:$0xf0]  ;;  %v2212_v4 = vor.u32 %v3200_v60, %v2211_v59  ;;  %v2203_v5 = vld [vmem:[%s5091_s1 + $0x10] sm:$0xf] }
  0x10   :  { %662 = vmatpush.bf16.msra.mxu0 %v2228_v44  ;;  %v2403_v0 = vld [vmem:[%s5091_s1 + $0x1a0] sm:$0xf]  ;;  %v3248_v1 = vld [vmem:[%s5091_s1 + $0x1a4] sm:$0xf0]  ;;  %v2340_v6 = vor.u32 %v3232_v63, %v2339_v61  ;;  %v3198_v8 = vld [vmem:[%s5091_s1 + $0x14] sm:$0xf0] }
  0x11   :  { %690 = vmatpush.bf16.msra.mxu2 %v2356_v45  ;;  %v2275_v2 = vld [vmem:[%s5091_s1 + $0xa0] sm:$0xf]  ;;  %v3216_v3 = vld [vmem:[%s5091_s1 + $0xa4] sm:$0xf0]  ;;  %v2404_v7 = vor.u32 %v3248_v1, %v2403_v0  ;;  %v2331_v9 = vld [vmem:[%s5091_s1 + $0x110] sm:$0xf]  ;;  %v2204_v18 = vor.u32 %v3198_v8, %v2203_v5 }
  0x12   :  { %704 = vmatpush.bf16.msra.mxu3 %v2420_v46  ;;  %v3230_v10 = vld [vmem:[%s5091_s1 + $0x114] sm:$0xf0]  ;;  %v2276_v11 = vor.u32 %v3216_v3, %v2275_v2  ;;  %v2395_v12 = vld [vmem:[%s5091_s1 + $0x190] sm:$0xf]  ;;  %v2195_v16 = vld [vmem:[%s5091_s1] sm:$0xf] }
  0x13   :  { %676 = vmatpush.bf16.msra.mxu1 %v2292_v50  ;;  %v3246_v13 = vld [vmem:[%s5091_s1 + $0x194] sm:$0xf0]  ;;  %v2267_v14 = vld [vmem:[%s5091_s1 + $0x90] sm:$0xf]  ;;  %v3196_v17 = vld [vmem:[%s5091_s1 + $0x4] sm:$0xf0]  ;;  %v2332_v23 = vor.u32 %v3230_v10, %v2331_v9 }
  0x14   :  { %663 = vmatpush.bf16.msra.mxu0 %v2220_v56  ;;  %v3214_v15 = vld [vmem:[%s5091_s1 + $0x94] sm:$0xf0]  ;;  %v2323_v19 = vld [vmem:[%s5091_s1 + $0x100] sm:$0xf]  ;;  %v3228_v20 = vld [vmem:[%s5091_s1 + $0x104] sm:$0xf0]  ;;  %v2396_v24 = vor.u32 %v3246_v13, %v2395_v12  ;;  %v2196_v35 = vor.u32 %v3196_v17, %v2195_v16 }
  0x15   :  { %691 = vmatpush.bf16.msra.mxu2 %v2348_v57  ;;  %v2387_v21 = vld [vmem:[%s5091_s1 + $0x180] sm:$0xf]  ;;  %v3244_v22 = vld [vmem:[%s5091_s1 + $0x184] sm:$0xf0]  ;;  %v2507_v25 = vld [vmem:[%s5091_s1 + $0x270] sm:$0xf]  ;;  %v2268_v28 = vor.u32 %v3214_v15, %v2267_v14  ;;  %v2324_v39 = vor.u32 %v3228_v20, %v2323_v19 }
  0x16   :  { %705 = vmatpush.bf16.msra.mxu3 %v2412_v58  ;;  %v3274_v26 = vld [vmem:[%s5091_s1 + $0x274] sm:$0xf0]  ;;  %v3209_v27 = vld [vmem:[%s5091_s1 + $0x74] sm:$0xf]  ;;  %v2253_v29 = vld [vmem:[%s5091_s1 + $0x78] sm:$0xf0]  ;;  %v2388_v40 = vor.u32 %v3244_v22, %v2387_v21 }
  0x17   :  { %677 = vmatpush.bf16.msra.mxu1 %v2284_v62  ;;  %v2259_v30 = vld [vmem:[%s5091_s1 + $0x80] sm:$0xf]  ;;  %v3212_v31 = vld [vmem:[%s5091_s1 + $0x84] sm:$0xf0]  ;;  %v42_v32 = vld [vmem:[%s5090_s0 + $0x10] sm:$0xff]  ;;  %v2508_v44 = vor.u32 %v3274_v26, %v2507_v25  ;;  %v2256_v45 = vor.u32 %v3209_v27, %v2253_v29 }
  0x18   :  { %664 = vmatpush.bf16.msra.mxu0 %v2212_v4  ;;  %v49_v33 = vld [vmem:[%s5090_s0 + $0x48] sm:$0xff]  ;;  %v2571_v34 = vld [vmem:[%s5091_s1 + $0x2f0] sm:$0xf]  ;;  %v3290_v36 = vld [vmem:[%s5091_s1 + $0x2f4] sm:$0xf0]  ;;  %v2260_v49 = vor.u32 %v3212_v31, %v2259_v30 }
  0x19   :  { %692 = vmatpush.bf16.msra.mxu2 %v2340_v6  ;;  %v2579_v37 = vld [vmem:[%s5091_s1 + $0x300] sm:$0xf]  ;;  %v3292_v38 = vld [vmem:[%s5091_s1 + $0x304] sm:$0xf0]  ;;  %v3225_v41 = vld [vmem:[%s5091_s1 + $0xf4] sm:$0xf]  ;;  %v3788_v54 = vpack.c.bf16 %v49_v33, %v42_v32  ;;  %v2572_v55 = vor.u32 %v3290_v36, %v2571_v34 }
  0x1a   :  { %706 = vmatpush.bf16.msra.mxu3 %v2404_v7  ;;  %v2317_v42 = vld [vmem:[%s5091_s1 + $0xf8] sm:$0xf0]  ;;  %v40_v43 = vld [vmem:[%s5090_s0] sm:$0xff]  ;;  %v50_v48 = vld [vmem:[%s5090_s0 + $0x50] sm:$0xff]  ;;  %v2580_v50 = vor.u32 %v3292_v38, %v2579_v37 }
  0x1b   :  { %678 = vmatpush.bf16.msra.mxu1 %v2276_v11  ;;  %v47_v46 = vld [vmem:[%s5090_s0 + $0x38] sm:$0xff]  ;;  %v2499_v51 = vld [vmem:[%s5091_s1 + $0x260] sm:$0xf]  ;;  %v3272_v52 = vld [vmem:[%s5091_s1 + $0x264] sm:$0xf0]  ;;  %v2320_v59 = vor.u32 %v3225_v41, %v2317_v42 }
  0x1c   :  { %665 = vmatpush.bf16.msra.mxu0 %v2204_v18  ;;  %v43_v47 = vld [vmem:[%s5090_s0 + $0x18] sm:$0xff]  ;;  %v3207_v53 = vld [vmem:[%s5091_s1 + $0x64] sm:$0xf]  ;;  %v2245_v56 = vld [vmem:[%s5091_s1 + $0x68] sm:$0xf0]  ;;  %v3799_v60 = vpack.c.bf16 %v47_v46, %v40_v43  ;;  %v2500_v0 = vor.u32 %v3272_v52, %v2499_v51 }
  0x1d   :  { %693 = vmatpush.bf16.msra.mxu2 %v2332_v23  ;;  %v41_v57 = vld [vmem:[%s5090_s0 + $0x8] sm:$0xff]  ;;  %v48_v58 = vld [vmem:[%s5090_s0 + $0x40] sm:$0xff]  ;;  %v3807_v63 = vpack.c.bf16 %v50_v48, %v43_v47  ;;  %v2248_v3 = vor.u32 %v3207_v53, %v2245_v56  ;;  %v2491_v5 = vld [vmem:[%s5091_s1 + $0x250] sm:$0xf] }
  0x1e   :  { %707 = vmatpush.bf16.msra.mxu3 %v2396_v24  ;;  %v2563_v61 = vld [vmem:[%s5091_s1 + $0x2e0] sm:$0xf]  ;;  %v3288_v62 = vld [vmem:[%s5091_s1 + $0x2e4] sm:$0xf0]  ;;  %v3223_v1 = vld [vmem:[%s5091_s1 + $0xe4] sm:$0xf]  ;;  %v3815_v4 = vpack.c.bf16 %v48_v58, %v41_v57 }
  0x1f   :  { %679 = vmatpush.bf16.msra.mxu1 %v2268_v28  ;;  %v2309_v2 = vld [vmem:[%s5091_s1 + $0xe8] sm:$0xf0]  ;;  %v3270_v6 = vld [vmem:[%s5091_s1 + $0x254] sm:$0xf0]  ;;  %v2564_v7 = vor.u32 %v3288_v62, %v2563_v61  ;;  %v3205_v8 = vld [vmem:[%s5091_s1 + $0x54] sm:$0xf] }
  0x20   :  { %666 = vmatpush.bf16.msra.mxu0 %v2196_v35  ;;  %v2237_v9 = vld [vmem:[%s5091_s1 + $0x58] sm:$0xf0]  ;;  %v2312_v10 = vor.u32 %v3223_v1, %v2309_v2  ;;  %v2555_v11 = vld [vmem:[%s5091_s1 + $0x2d0] sm:$0xf]  ;;  %v3286_v12 = vld [vmem:[%s5091_s1 + $0x2d4] sm:$0xf0]  ;;  %v2492_v13 = vor.u32 %v3270_v6, %v2491_v5 }
  0x21   :  { %694 = vmatpush.bf16.msra.mxu2 %v2324_v39  ;;  %v3221_v14 = vld [vmem:[%s5091_s1 + $0xd4] sm:$0xf]  ;;  %v2301_v15 = vld [vmem:[%s5091_s1 + $0xd8] sm:$0xf0]  ;;  %v2240_v16 = vor.u32 %v3205_v8, %v2237_v9  ;;  %v2483_v17 = vld [vmem:[%s5091_s1 + $0x240] sm:$0xf]  ;;  %v2556_v19 = vor.u32 %v3286_v12, %v2555_v11 }
  0x22   :  { %708 = vmatpush.bf16.msra.mxu3 %v2388_v40  ;;  %v3268_v18 = vld [vmem:[%s5091_s1 + $0x244] sm:$0xf0]  ;;  %v3203_v20 = vld [vmem:[%s5091_s1 + $0x44] sm:$0xf]  ;;  %v2229_v21 = vld [vmem:[%s5091_s1 + $0x48] sm:$0xf0]  ;;  %v2304_v22 = vor.u32 %v3221_v14, %v2301_v15 }
  0x23   :  { %680 = vmatpush.bf16.msra.mxu1 %v2260_v49  ;;  %667 = vmatmul.bf16.vlgmr.msra.gmra.mxu0 %v3799_v60  ;;  %v2547_v23 = vld [vmem:[%s5091_s1 + $0x2c0] sm:$0xf]  ;;  %v3284_v24 = vld [vmem:[%s5091_s1 + $0x2c4] sm:$0xf0]  ;;  %v2484_v25 = vor.u32 %v3268_v18, %v2483_v17  ;;  %v3219_v26 = vld [vmem:[%s5091_s1 + $0xc4] sm:$0xf]  ;;  %v2232_v28 = vor.u32 %v3203_v20, %v2229_v21 }
  0x24   :  { %715 = vmatpush.bf16.msrb.mxu0 %v2508_v44  ;;  %695 = vmatmul.bf16.vlgmr.msra.gmra.mxu2 %v3788_v54  ;;  %v2293_v27 = vld [vmem:[%s5091_s1 + $0xc8] sm:$0xf0]  ;;  %v2475_v29 = vld [vmem:[%s5091_s1 + $0x230] sm:$0xf]  ;;  %v3266_v30 = vld [vmem:[%s5091_s1 + $0x234] sm:$0xf0]  ;;  %v2548_v31 = vor.u32 %v3284_v24, %v2547_v23 }
  0x25   :  { %750 = vmatpush.bf16.msrb.mxu2 %v2580_v50  ;;  %709 = vmatmul.bf16.vlgmr.msra.gmra.mxu3 %v3807_v63  ;;  %v3201_v32 = vld [vmem:[%s5091_s1 + $0x34] sm:$0xf]  ;;  %v2221_v33 = vld [vmem:[%s5091_s1 + $0x38] sm:$0xf0]  ;;  %v2539_v34 = vld [vmem:[%s5091_s1 + $0x2b0] sm:$0xf]  ;;  %v2296_v35 = vor.u32 %v3219_v26, %v2293_v27  ;;  %v2476_v39 = vor.u32 %v3266_v30, %v2475_v29 }
  0x26   :  { %757 = vmatpush.bf16.msrb.mxu3 %v2256_v45  ;;  %681 = vmatmul.bf16.vlgmr.msra.gmra.mxu1 %v3815_v4  ;;  %v3282_v36 = vld [vmem:[%s5091_s1 + $0x2b4] sm:$0xf0]  ;;  %v46_v37 = vld [vmem:[%s5090_s0 + $0x30] sm:$0xff]  ;;  %v53_v38 = vld [vmem:[%s5090_s0 + $0x68] sm:$0xff]  ;;  %v2224_v42 = vor.u32 %v3201_v32, %v2221_v33 }
  0x27   :  { %729 = vmatpush.bf16.msrb.mxu1 %v2572_v55  ;;  %v3217_v40 = vld [vmem:[%s5091_s1 + $0xb4] sm:$0xf]  ;;  %v2285_v41 = vld [vmem:[%s5091_s1 + $0xb8] sm:$0xf0]  ;;  %v2467_v43 = vld [vmem:[%s5091_s1 + $0x220] sm:$0xf]  ;;  %v2540_v45 = vor.u32 %v3282_v36, %v2539_v34  ;;  %v3911_v48 = vpack.c.bf16 %v53_v38, %v46_v37 }
  0x28   :  { %716 = vmatpush.bf16.msrb.mxu0 %v2500_v0  ;;  %v3264_v44 = vld [vmem:[%s5091_s1 + $0x224] sm:$0xf0]  ;;  %v3199_v46 = vld [vmem:[%s5091_s1 + $0x24] sm:$0xf]  ;;  %v2213_v47 = vld [vmem:[%s5091_s1 + $0x28] sm:$0xf0]  ;;  %v2288_v49 = vor.u32 %v3217_v40, %v2285_v41 }
  0x29   :  { %771 = vmatpush.bf16.msra.mxu2 %v2320_v59  ;;  %v2531_v50 = vld [vmem:[%s5091_s1 + $0x2a0] sm:$0xf]  ;;  %v3280_v51 = vld [vmem:[%s5091_s1 + $0x2a4] sm:$0xf0]  ;;  %v2468_v52 = vor.u32 %v3264_v44, %v2467_v43  ;;  %v3215_v53 = vld [vmem:[%s5091_s1 + $0xa4] sm:$0xf]  ;;  %v2216_v56 = vor.u32 %v3199_v46, %v2213_v47 }
  0x2a   :  { %758 = vmatpush.bf16.msrb.mxu3 %v2248_v3  ;;  %v2277_v55 = vld [vmem:[%s5091_s1 + $0xa8] sm:$0xf0]  ;;  %v2459_v57 = vld [vmem:[%s5091_s1 + $0x210] sm:$0xf]  ;;  %v3262_v58 = vld [vmem:[%s5091_s1 + $0x214] sm:$0xf0]  ;;  %v2532_v61 = vor.u32 %v3280_v51, %v2531_v50 }
  0x2b   :  { %730 = vmatpush.bf16.msrb.mxu1 %v2564_v7  ;;  %v3197_v59 = vld [vmem:[%s5091_s1 + $0x14] sm:$0xf]  ;;  %v2205_v62 = vld [vmem:[%s5091_s1 + $0x18] sm:$0xf0]  ;;  %v2523_v0 = vld [vmem:[%s5091_s1 + $0x290] sm:$0xf]  ;;  %v2280_v2 = vor.u32 %v3215_v53, %v2277_v55  ;;  %v2460_v7 = vor.u32 %v3262_v58, %v2459_v57 }
  0x2c   :  { %717 = vmatpush.bf16.msrb.mxu0 %v2492_v13  ;;  %v3278_v1 = vld [vmem:[%s5091_s1 + $0x294] sm:$0xf0]  ;;  %v3213_v3 = vld [vmem:[%s5091_s1 + $0x94] sm:$0xf]  ;;  %v2269_v5 = vld [vmem:[%s5091_s1 + $0x98] sm:$0xf0]  ;;  %v2208_v11 = vor.u32 %v3197_v59, %v2205_v62 }
  0x2d   :  { %772 = vmatpush.bf16.msra.mxu2 %v2312_v10  ;;  %v2451_v6 = vld [vmem:[%s5091_s1 + $0x200] sm:$0xf]  ;;  %v3260_v8 = vld [vmem:[%s5091_s1 + $0x204] sm:$0xf0]  ;;  %v3195_v9 = vld [vmem:[%s5091_s1 + $0x4] sm:$0xf]  ;;  %v2524_v15 = vor.u32 %v3278_v1, %v2523_v0 }
  0x2e   :  { %759 = vmatpush.bf16.msrb.mxu3 %v2240_v16  ;;  %v2197_v10 = vld [vmem:[%s5091_s1 + $0x8] sm:$0xf0]  ;;  %v3241_v12 = vld [vmem:[%s5091_s1 + $0x174] sm:$0xf]  ;;  %v2381_v13 = vld [vmem:[%s5091_s1 + $0x178] sm:$0xf0]  ;;  %v2452_v23 = vor.u32 %v3260_v8, %v2451_v6 }
  0x2f   :  { %731 = vmatpush.bf16.msrb.mxu1 %v2556_v19  ;;  %v3273_v14 = vld [vmem:[%s5091_s1 + $0x274] sm:$0xf]  ;;  %v2509_v16 = vld [vmem:[%s5091_s1 + $0x278] sm:$0xf0]  ;;  %v2515_v17 = vld [vmem:[%s5091_s1 + $0x280] sm:$0xf]  ;;  %v2272_v19 = vor.u32 %v3213_v3, %v2269_v5  ;;  %v2200_v27 = vor.u32 %v3195_v9, %v2197_v10 }
  0x30   :  { %718 = vmatpush.bf16.msrb.mxu0 %v2484_v25  ;;  %v3276_v18 = vld [vmem:[%s5091_s1 + $0x284] sm:$0xf0]  ;;  %v44_v20 = vld [vmem:[%s5090_s0 + $0x20] sm:$0xff]  ;;  %v51_v21 = vld [vmem:[%s5090_s0 + $0x58] sm:$0xff]  ;;  %v2512_v32 = vor.u32 %v3273_v14, %v2509_v16 }
  0x31   :  { %773 = vmatpush.bf16.msra.mxu2 %v2304_v22  ;;  %v3211_v22 = vld [vmem:[%s5091_s1 + $0x84] sm:$0xf]  ;;  %v2261_v24 = vld [vmem:[%s5091_s1 + $0x88] sm:$0xf0]  ;;  %v3257_v25 = vld [vmem:[%s5091_s1 + $0x1f4] sm:$0xf]  ;;  %v2516_v33 = vor.u32 %v3276_v18, %v2515_v17  ;;  %v4017_v37 = vpack.c.bf16 %v51_v21, %v44_v20 }
  0x32   :  { %760 = vmatpush.bf16.msrb.mxu3 %v2232_v28  ;;  %v2445_v26 = vld [vmem:[%s5091_s1 + $0x1f8] sm:$0xf0]  ;;  %v2384_v28 = vor.u32 %v3241_v12, %v2381_v13  ;;  %v3289_v29 = vld [vmem:[%s5091_s1 + $0x2f4] sm:$0xf]  ;;  %v52_v34 = vld [vmem:[%s5090_s0 + $0x60] sm:$0xff]  ;;  %v2264_v38 = vor.u32 %v3211_v22, %v2261_v24 }
  0x33   :  { %732 = vmatpush.bf16.msrb.mxu1 %v2548_v31  ;;  %v2573_v30 = vld [vmem:[%s5091_s1 + $0x2f8] sm:$0xf0]  ;;  %v45_v31 = vld [vmem:[%s5090_s0 + $0x28] sm:$0xff]  ;;  %v2448_v41 = vor.u32 %v3257_v25, %v2445_v26  ;;  %v3255_v43 = vld [vmem:[%s5091_s1 + $0x1e4] sm:$0xf] }
  0x34   :  { %719 = vmatpush.bf16.msrb.mxu0 %v2476_v39  ;;  %2585 = vmatmul.msk.bf16.vlgmr.msrb.gmra.mxu2 %vm655_vm0, %v3911_v48  ;;  %v2373_v36 = vld [vmem:[%s5091_s1 + $0x168] sm:$0xf0]  ;;  %v3271_v39 = vld [vmem:[%s5091_s1 + $0x264] sm:$0xf]  ;;  %v4028_v44 = vpack.c.bf16 %v52_v34, %v45_v31  ;;  %v3237_v51 = vld [vmem:[%s5091_s1 + $0x154] sm:$0xf] }
  0x35   :  { %774 = vmatpush.bf16.msra.mxu2 %v2296_v35  ;;  %v3239_v35 = vld [vmem:[%s5091_s1 + $0x164] sm:$0xf]  ;;  %v2501_v40 = vld [vmem:[%s5091_s1 + $0x268] sm:$0xf0]  ;;  %v3269_v53 = vld [vmem:[%s5091_s1 + $0x254] sm:$0xf] }
  0x36   :  { %761 = vmatpush.bf16.msrb.mxu3 %v2224_v42  ;;  %v2576_v42 = vor.u32 %v3289_v29, %v2573_v30  ;;  %v2437_v46 = vld [vmem:[%s5091_s1 + $0x1e8] sm:$0xf0]  ;;  %v3287_v47 = vld [vmem:[%s5091_s1 + $0x2e4] sm:$0xf]  ;;  %v2504_v50 = vor.u32 %v3271_v39, %v2501_v40  ;;  %v2493_v55 = vld [vmem:[%s5091_s1 + $0x258] sm:$0xf0] }
  0x37   :  { %733 = vmatpush.bf16.msrb.mxu1 %v2540_v45  ;;  %v2376_v45 = vor.u32 %v3239_v35, %v2373_v36  ;;  %v3253_v58 = vld [vmem:[%s5091_s1 + $0x1d4] sm:$0xf]  ;;  %v2557_v0 = vld [vmem:[%s5091_s1 + $0x2d8] sm:$0xf0]  ;;  %v2496_v1 = vor.u32 %v3269_v53, %v2493_v55  ;;  %v2357_v3 = vld [vmem:[%s5091_s1 + $0x148] sm:$0xf0] }
  0x38   :  { %720 = vmatpush.bf16.msrb.mxu0 %v2468_v52  ;;  %v2365_v52 = vld [vmem:[%s5091_s1 + $0x158] sm:$0xf0]  ;;  %v3285_v62 = vld [vmem:[%s5091_s1 + $0x2d4] sm:$0xf]  ;;  %v3267_v5 = vld [vmem:[%s5091_s1 + $0x244] sm:$0xf] }
  0x39   :  { %775 = vmatpush.bf16.msra.mxu2 %v2288_v49  ;;  %v2565_v49 = vld [vmem:[%s5091_s1 + $0x2e8] sm:$0xf0]  ;;  %v2368_v59 = vor.u32 %v3237_v51, %v2365_v52  ;;  %v2560_v8 = vor.u32 %v3285_v62, %v2557_v0  ;;  %v3283_v9 = vld [vmem:[%s5091_s1 + $0x2c4] sm:$0xf] }
  0x3a   :  { %762 = vmatpush.bf16.msrb.mxu3 %v2216_v56  ;;  %v2440_v56 = vor.u32 %v3255_v43, %v2437_v46  ;;  %v2568_v57 = vor.u32 %v3287_v47, %v2565_v49  ;;  %v2485_v6 = vld [vmem:[%s5091_s1 + $0x248] sm:$0xf0] }
  0x3b   :  { %734 = vmatpush.bf16.msrb.mxu1 %v2532_v61  ;;  %v2429_v61 = vld [vmem:[%s5091_s1 + $0x1d8] sm:$0xf0]  ;;  %v2549_v10 = vld [vmem:[%s5091_s1 + $0x2c8] sm:$0xf0] }
  0x3c   :  { %721 = vmatpush.bf16.msrb.mxu0 %v2460_v7  ;;  %v2432_v7 = vor.u32 %v3253_v58, %v2429_v61 }
  0x3d   :  { %776 = vmatpush.bf16.msra.mxu2 %v2280_v2  ;;  %v3235_v2 = vld [vmem:[%s5091_s1 + $0x144] sm:$0xf] }
  0x3e   :  { %763 = vmatpush.bf16.msrb.mxu3 %v2208_v11  ;;  %v2360_v11 = vor.u32 %v3235_v2, %v2357_v3 }
  0x3f   :  { %735 = vmatpush.bf16.msrb.mxu1 %v2524_v15 }
  0x40   :  { %722 = vmatpush.bf16.msrb.mxu0 %v2452_v23 }
  0x41   :  { %777 = vmatpush.bf16.msra.mxu2 %v2272_v19 }
  0x42   :  { %764 = vmatpush.bf16.msrb.mxu3 %v2200_v27 }
  0x43   :  { %736 = vmatpush.bf16.msrb.mxu1 %v2516_v33  ;;  %723 = vmatmul.bf16.vlgmr.msrb.gmra.mxu0 %v4017_v37 }
  0x44   :  { %785 = vmatpush.bf16.msra.mxu0 %v2384_v28 }
  0x45   :  { %778 = vmatpush.bf16.msra.mxu2 %v2264_v38  ;;  %765 = vmatmul.bf16.vlgmr.msrb.gmra.mxu3 %v3799_v60  ;;  %v2421_v60 = vld [vmem:[%s5091_s1 + $0x1c8] sm:$0xf0] }
  0x46   :  { %813 = vmatpush.bf16.msra.mxu3 %v2512_v32  ;;  %737 = vmatmul.bf16.vlgmr.msrb.gmra.mxu1 %v4028_v44 }
  0x47   :  { %799 = vmatpush.bf16.msra.mxu1 %v2448_v41 }
  0x48   :  { %786 = vmatpush.bf16.msra.mxu0 %v2376_v45  ;;  %779 = vmatmul.bf16.vlgmr.msra.gmra.mxu2 %v3815_v4  ;;  %v3251_v4 = vld [vmem:[%s5091_s1 + $0x1c4] sm:$0xf] }
  0x49   :  { %827 = vmatpush.bf16.msrb.mxu2 %v2576_v42 }
  0x4a   :  { %814 = vmatpush.bf16.msra.mxu3 %v2504_v50 }
  0x4b   :  { %800 = vmatpush.bf16.msra.mxu1 %v2440_v56 }
  0x4c   :  { %787 = vmatpush.bf16.msra.mxu0 %v2368_v59 }
  0x4d   :  { %828 = vmatpush.bf16.msrb.mxu2 %v2568_v57 }
  0x4e   :  { %16 = vsyncpa [#allocation3], 0  ;;  %815 = vmatpush.bf16.msra.mxu3 %v2496_v1  ;;  %v2488_v12 = vor.u32 %v3267_v5, %v2485_v6  ;;  %v3233_v13 = vld [vmem:[%s5091_s1 + $0x134] sm:$0xf]  ;;  %v2349_v14 = vld [vmem:[%s5091_s1 + $0x138] sm:$0xf0]  ;;  %v2424_v17 = vor.u32 %v3251_v4, %v2421_v60  ;;  %v2552_v18 = vor.u32 %v3283_v9, %v2549_v10 }
  0x4f   :  { %v3265_v15 = vld [vmem:[%s5091_s1 + $0x234] sm:$0xf]  ;;  %v2477_v16 = vld [vmem:[%s5091_s1 + $0x238] sm:$0xf0]  ;;  %801 = vmatpush.bf16.msra.mxu1 %v2432_v7  ;;  %v2352_v20 = vor.u32 %v3233_v13, %v2349_v14  ;;  %v3231_v25 = vld [vmem:[%s5091_s1 + $0x124] sm:$0xf] }
  0x50   :  { %v3249_v19 = vld [vmem:[%s5091_s1 + $0x1b4] sm:$0xf]  ;;  %788 = vmatpush.bf16.msra.mxu0 %v2360_v11  ;;  %v2413_v21 = vld [vmem:[%s5091_s1 + $0x1b8] sm:$0xf0]  ;;  %v2480_v24 = vor.u32 %v3265_v15, %v2477_v16  ;;  %v2341_v26 = vld [vmem:[%s5091_s1 + $0x128] sm:$0xf0] }
  0x51   :  { %829 = vmatpush.bf16.msrb.mxu2 %v2560_v8  ;;  %v3281_v22 = vld [vmem:[%s5091_s1 + $0x2b4] sm:$0xf]  ;;  %v2541_v23 = vld [vmem:[%s5091_s1 + $0x2b8] sm:$0xf0]  ;;  %v3263_v27 = vld [vmem:[%s5091_s1 + $0x224] sm:$0xf]  ;;  %v2416_v29 = vor.u32 %v3249_v19, %v2413_v21  ;;  %v2344_v32 = vor.u32 %v3231_v25, %v2341_v26 }
  0x52   :  { %816 = vmatpush.bf16.msra.mxu3 %v2488_v12  ;;  %v2469_v28 = vld [vmem:[%s5091_s1 + $0x228] sm:$0xf0]  ;;  %v2544_v30 = vor.u32 %v3281_v22, %v2541_v23  ;;  %v3247_v31 = vld [vmem:[%s5091_s1 + $0x1a4] sm:$0xf]  ;;  %v3229_v38 = vld [vmem:[%s5091_s1 + $0x114] sm:$0xf] }
  0x53   :  { %802 = vmatpush.bf16.msra.mxu1 %v2424_v17  ;;  %v2405_v33 = vld [vmem:[%s5091_s1 + $0x1a8] sm:$0xf0]  ;;  %v3279_v34 = vld [vmem:[%s5091_s1 + $0x2a4] sm:$0xf]  ;;  %v2472_v36 = vor.u32 %v3263_v27, %v2469_v28  ;;  %v2333_v39 = vld [vmem:[%s5091_s1 + $0x118] sm:$0xf0] }
  0x54   :  { %789 = vmatpush.bf16.msra.mxu0 %v2352_v20  ;;  %v2533_v35 = vld [vmem:[%s5091_s1 + $0x2a8] sm:$0xf0]  ;;  %v3261_v40 = vld [vmem:[%s5091_s1 + $0x214] sm:$0xf]  ;;  %v2461_v41 = vld [vmem:[%s5091_s1 + $0x218] sm:$0xf0]  ;;  %v2408_v42 = vor.u32 %v3247_v31, %v2405_v33  ;;  %v2336_v46 = vor.u32 %v3229_v38, %v2333_v39 }
  0x55   :  { %830 = vmatpush.bf16.msrb.mxu2 %v2552_v18  ;;  %v2536_v43 = vor.u32 %v3279_v34, %v2533_v35  ;;  %v3245_v45 = vld [vmem:[%s5091_s1 + $0x194] sm:$0xf]  ;;  %v2397_v47 = vld [vmem:[%s5091_s1 + $0x198] sm:$0xf0]  ;;  %v2464_v51 = vor.u32 %v3261_v40, %v2461_v41  ;;  %v3227_v52 = vld [vmem:[%s5091_s1 + $0x104] sm:$0xf] }
  0x56   :  { %817 = vmatpush.bf16.msra.mxu3 %v2480_v24  ;;  %v3277_v49 = vld [vmem:[%s5091_s1 + $0x294] sm:$0xf]  ;;  %v2525_v50 = vld [vmem:[%s5091_s1 + $0x298] sm:$0xf0]  ;;  %v2325_v53 = vld [vmem:[%s5091_s1 + $0x108] sm:$0xf0]  ;;  %v2400_v57 = vor.u32 %v3245_v45, %v2397_v47 }
  0x57   :  { %803 = vmatpush.bf16.msra.mxu1 %v2416_v29  ;;  %v3259_v55 = vld [vmem:[%s5091_s1 + $0x204] sm:$0xf]  ;;  %v2453_v56 = vld [vmem:[%s5091_s1 + $0x208] sm:$0xf0]  ;;  %v2528_v58 = vor.u32 %v3277_v49, %v2525_v50  ;;  %v2328_v59 = vor.u32 %v3227_v52, %v2325_v53  ;;  %v3300_v8 = vld [vmem:[%s5093_s3 + $0x38] sm:$0xff]  ;;  %s2181_s25 = sshll.u32 %s5101_s11, 4  ;;  %s2182_s25 = int_to_ptr.hbm [resolvable:$true] %s2181_s25 }
  0x58   :  { %790 = vmatpush.bf16.msra.mxu0 %v2344_v32  ;;  %v3243_v61 = vld [vmem:[%s5091_s1 + $0x184] sm:$0xf]  ;;  %v2389_v62 = vld [vmem:[%s5091_s1 + $0x188] sm:$0xf0]  ;;  %v2456_v0 = vor.u32 %v3259_v55, %v2453_v56  ;;  %v4223_v9 = vld [vmem:[%s5092_s2] sm:$0x3] }
  0x59   :  { %831 = vmatpush.bf16.msrb.mxu2 %v2544_v30  ;;  %v3275_v1 = vld [vmem:[%s5091_s1 + $0x284] sm:$0xf]  ;;  %v2517_v2 = vld [vmem:[%s5091_s1 + $0x288] sm:$0xf0]  ;;  %v2392_v6 = vor.u32 %v3243_v61, %v2389_v62  ;;  %v161_v14 = vperm.slane %v4223_v9, 0  ;;  %v3308_v31 = vld [vmem:[%s5093_s3 + $0x78] sm:$0xff] }
  0x5a   :  { %818 = vmatpush.bf16.msra.mxu3 %v2472_v36  ;;  %v3291_v3 = vld [vmem:[%s5091_s1 + $0x304] sm:$0xf]  ;;  %v2581_v5 = vld [vmem:[%s5091_s1 + $0x308] sm:$0xf0]  ;;  %v2520_v4 = vor.u32 %v3275_v1, %v2517_v2  ;;  %v3307_v36 = vld [vmem:[%s5093_s3 + $0x70] sm:$0xff]  ;;  %v162_v62 = vperm.slane %v4223_v9, 1 }
  0x5b   :  { %804 = vmatpush.bf16.msra.mxu1 %v2408_v42  ;;  %v2584_v7 = vor.u32 %v3291_v3, %v2581_v5  ;;  %v3294_v60 = vld [vmem:[%s5093_s3 + $0x8] sm:$0xff]  ;;  %v3293_v12 = vld [vmem:[%s5093_s3] sm:$0xff]  ;;  %v3303_v52 = vld [vmem:[%s5093_s3 + $0x50] sm:$0xff]  ;;  %s3477_s26 = smov 896   ;;  %s3478_s27 = smov 56  }
  0x5c   :  { %791 = vmatpush.bf16.msra.mxu0 %v2336_v46  ;;  %v3305_v47 = vld [vmem:[%s5093_s3 + $0x60] sm:$0xff]  ;;  %v3302_v55 = vld [vmem:[%s5093_s3 + $0x48] sm:$0xff] }
  0x5d   :  { %832 = vmatpush.bf16.msrb.mxu2 %v2536_v43  ;;  %v3306_v43 = vld [vmem:[%s5093_s3 + $0x68] sm:$0xff] }
  0x5e   :  { %819 = vmatpush.bf16.msra.mxu3 %v2464_v51  ;;  %v3304_v51 = vld [vmem:[%s5093_s3 + $0x58] sm:$0xff] }
  0x5f   :  { %805 = vmatpush.bf16.msra.mxu1 %v2400_v57  ;;  %v3301_v57 = vld [vmem:[%s5093_s3 + $0x40] sm:$0xff] }
  0x60   :  { %792 = vmatpush.bf16.msra.mxu0 %v2328_v59 }
  0x61   :  { %833 = vmatpush.bf16.msrb.mxu2 %v2528_v58 }
  0x62   :  { %820 = vmatpush.bf16.msra.mxu3 %v2456_v0 }
  0x63   :  { %806 = vmatpush.bf16.msra.mxu1 %v2392_v6  ;;  %793 = vmatmul.bf16.vlgmr.msra.gmra.mxu0 %v3788_v54  ;;  %v3299_v54 = vld [vmem:[%s5093_s3 + $0x30] sm:$0xff] }
  0x65   :  { %821 = vmatmul.bf16.vlgmr.msra.gmra.mxu3 %v4017_v37  ;;  %834 = vmatpush.bf16.msrb.mxu2 %v2520_v4  ;;  %v3298_v37 = vld [vmem:[%s5093_s3 + $0x28] sm:$0xff] }
  0x66   :  { %807 = vmatmul.bf16.vlgmr.msra.gmra.mxu1 %v3807_v63  ;;  %v3297_v63 = vld [vmem:[%s5093_s3 + $0x20] sm:$0xff]  ;;  %1007 = vmatpush.bf16.msrb.mxu3 %v3308_v31  ;;  %v2743_v31 = vld [vmem:[%s5097_s7 + $0x78] sm:$0xf0] }
  0x67   :  { %993 = vmatpush.bf16.msrb.mxu1 %v3300_v8 }
  0x68   :  { %835 = vmatmul.bf16.vlgmr.msrb.gmra.mxu2 %v4028_v44  ;;  %v3295_v44 = vld [vmem:[%s5093_s3 + $0x10] sm:$0xff] }
  0x69   :  { %848 = vmatpush.bf16.msra.mxu2 %v2584_v7 }
  0x6a   :  { %1008 = vmatpush.bf16.msrb.mxu3 %v3307_v36  ;;  %v2735_v36 = vld [vmem:[%s5097_s7 + $0x68] sm:$0xf0] }
  0x6b   :  { %994 = vmatpush.bf16.msrb.mxu1 %v3299_v54 }
  0x6e   :  { %1009 = vmatpush.bf16.msrb.mxu3 %v3306_v43  ;;  %v2727_v43 = vld [vmem:[%s5097_s7 + $0x58] sm:$0xf0] }
  0x6f   :  { %995 = vmatpush.bf16.msrb.mxu1 %v3298_v37 }
  0x72   :  { %1010 = vmatpush.bf16.msrb.mxu3 %v3305_v47  ;;  %v2717_v47 = vld [vmem:[%s5097_s7 + $0x40] sm:$0xf] }
  0x73   :  { %996 = vmatpush.bf16.msrb.mxu1 %v3297_v63 }
  0x76   :  { %1011 = vmatpush.bf16.msrb.mxu3 %v3304_v51  ;;  %v2719_v51 = vld [vmem:[%s5097_s7 + $0x48] sm:$0xf0] }
  0x78   :  { %2586 = vmatmul.msk.bf16.vlgmr.msra.gmra.mxu2 %vm655_vm0, %v3911_v48  ;;  %v3296_v48 = vld [vmem:[%s5093_s3 + $0x18] sm:$0xff] }
  0x79   :  { %997 = vmatpush.bf16.msrb.mxu1 %v3296_v48 }
  0x7a   :  { %1012 = vmatpush.bf16.msrb.mxu3 %v3303_v52 }
  0x7d   :  { %998 = vmatpush.bf16.msrb.mxu1 %v3295_v44 }
  0x7e   :  { %1013 = vmatpush.bf16.msrb.mxu3 %v3302_v55 }
  0x81   :  { %999 = vmatpush.bf16.msrb.mxu1 %v3294_v60 }
  0x82   :  { %1014 = vmatpush.bf16.msrb.mxu3 %v3301_v57  ;;  %v3448_v57 = vld [vmem:[%s5094_s4] ss:$0 sm:$0xff] }
  0x85   :  { %1000 = vmatpush.bf16.msrb.mxu1 %v3293_v12 }
  0xa0   :  { %v668_v10 = vpop.f32.mrf.mxu0 }
  0xa1   :  { %v669_v15 = vadd.f32 %v668_v10, %v161_v14 }
  0xa3   :  { %v682_v13 = vpop.f32.mrf.mxu1 }
  0xa4   :  { %v683_v17 = vadd.f32 %v682_v13, %v669_v15 }
  0xa7   :  { %v696_v11 = vpop.f32.mrf.mxu2 }
  0xa8   :  { %v670_v16 = vpop.f32.mrf.mxu0  ;;  %v710_v19 = vpop.f32.mrf.mxu3  ;;  %v697_v22 = vadd.f32 %v696_v11, %v683_v17 }
  0xa9   :  { %v671_v21 = vadd.f32 %v670_v16, %v161_v14 }
  0xaa   :  { %v711_v25 = vadd.f32 %v710_v19, %v697_v22  ;;  %v3316_v19 = vld [vmem:[%s5095_s5 + $0x38] sm:$0xff]  ;;  %v3313_v22 = vld [vmem:[%s5095_s5 + $0x20] sm:$0xff] }
  0xab   :  { %v684_v20 = vpop.f32.mrf.mxu1  ;;  %1092 = vmatpush.bf16.msrb.mxu0 %v3316_v19  ;;  %v3317_v19 = vld [vmem:[%s5097_s7 + $0x4] sm:$0xf] }
  0xac   :  { %v685_v23 = vadd.f32 %v684_v20, %v671_v21  ;;  %v3315_v20 = vld [vmem:[%s5095_s5 + $0x30] sm:$0xff]  ;;  %v3314_v21 = vld [vmem:[%s5095_s5 + $0x28] sm:$0xff] }
  0xaf   :  { %v698_v18 = vpop.f32.mrf.mxu2  ;;  %1093 = vmatpush.bf16.msrb.mxu0 %v3315_v20 }
  0xb0   :  { %v699_v28 = vadd.f32 %v698_v18, %v685_v23  ;;  %v712_v30 = vpop.f32.mrf.mxu3  ;;  %v3312_v23 = vld [vmem:[%s5095_s5 + $0x18] sm:$0xff] }
  0xb2   :  { %v713_v32 = vadd.f32 %v712_v30, %v699_v28  ;;  %v3332_v28 = vld [vmem:[%s5097_s7 + $0x74] sm:$0xf0] }
  0xb3   :  { %1094 = vmatpush.bf16.msrb.mxu0 %v3314_v21  ;;  %v2687_v21 = vld [vmem:[%s5097_s7 + $0x8] sm:$0xf0] }
  0xb7   :  { %v752_v26 = vpop.f32.mrf.mxu2  ;;  %1095 = vmatpush.bf16.msrb.mxu0 %v3313_v22  ;;  %v2690_v22 = vor.u32 %v3317_v19, %v2687_v21  ;;  %v3031_v21 = vld [vmem:[%s5099_s9 + $0x24c] sm:$0xf0] }
  0xbb   :  { %1096 = vmatpush.bf16.msrb.mxu0 %v3312_v23  ;;  %v3169_v23 = vld [vmem:[%s5099_s9 + $0x348] sm:$0xf] }
  0xbf   :  { %v754_v40 = vpop.f32.mrf.mxu2 }
  0xc0   :  { %v724_v24 = vpop.f32.mrf.mxu0 }
  0xc1   :  { %v725_v29 = vadd.f32 %v724_v24, %v711_v25  ;;  %v3311_v24 = vld [vmem:[%s5095_s5 + $0x10] sm:$0xff]  ;;  %v3310_v25 = vld [vmem:[%s5095_s5 + $0x8] sm:$0xff] }
  0xc2   :  { %1097 = vmatpush.bf16.msrb.mxu0 %v3311_v24  ;;  %v3441_v24 = vld [vmem:[%s5099_s9 + $0x360] sm:$0xf0] }
  0xc3   :  { %v738_v27 = vpop.f32.mrf.mxu1 }
  0xc4   :  { %v739_v33 = vadd.f32 %v738_v27, %v725_v29  ;;  %v2741_v27 = vld [vmem:[%s5097_s7 + $0x70] sm:$0xf]  ;;  %v3331_v29 = vld [vmem:[%s5097_s7 + $0x74] sm:$0xf] }
  0xc5   :  { %v2742_v30 = vor.u32 %v3332_v28, %v2741_v27  ;;  %v3171_v27 = vld [vmem:[%s5099_s9 + $0x364] sm:$0xf0]  ;;  %v3141_v28 = vld [vmem:[%s5099_s9 + $0x310] sm:$0xf] }
  0xc6   :  { %v753_v39 = vadd.f32 %v752_v26, %v739_v33  ;;  %1098 = vmatpush.bf16.msrb.mxu0 %v3310_v25  ;;  %v3309_v26 = vld [vmem:[%s5095_s5] sm:$0xff]  ;;  %v3330_v33 = vld [vmem:[%s5097_s7 + $0x64] sm:$0xf0]  ;;  %v3438_v25 = vld [vmem:[%s5099_s9 + $0x34c] sm:$0xf] }
  0xc7   :  { %1211 = vmatpush.bf16.msrb.mxu2 %v2742_v30  ;;  %v3174_v30 = vor.u32 %v3438_v25, %v3171_v27  ;;  %v3347_v27 = vld [vmem:[%s5099_s9 + $0x74] sm:$0xf] }
  0xc8   :  { %v726_v34 = vpop.f32.mrf.mxu0  ;;  %v855_v45 = vmax.f32 %v753_v39, 0.0  ;;  %v766_v53 = vpop.f32.mrf.mxu3 }
  0xc9   :  { %v727_v35 = vadd.f32 %v726_v34, %v713_v32  ;;  %v767_v1 = vadd.f32 %v766_v53, %v162_v62  ;;  %v2733_v32 = vld [vmem:[%s5097_s7 + $0x60] sm:$0xf]  ;;  %v2746_v34 = vor.u32 %v3331_v29, %v2743_v31  ;;  %v3434_v29 = vld [vmem:[%s5099_s9 + $0x328] sm:$0xf0]  ;;  %v3431_v31 = vld [vmem:[%s5099_s9 + $0x314] sm:$0xf] }
  0xca   :  { %1099 = vmatpush.bf16.msrb.mxu0 %v3309_v26  ;;  %v3170_v26 = vor.u32 %v3441_v24, %v3169_v23  ;;  %v2805_v24 = vld [vmem:[%s5099_s9 + $0x70] sm:$0xf] }
  0xcb   :  { %v740_v38 = vpop.f32.mrf.mxu1  ;;  %v780_v50 = vpop.f32.mrf.mxu2  ;;  %1225 = vmatpush.bf16.msra.mxu1 %v2746_v34  ;;  %v3142_v34 = vor.u32 %v3434_v29, %v3141_v28  ;;  %v2807_v28 = vld [vmem:[%s5099_s9 + $0x8c] sm:$0xf0]  ;;  %v3449_v29 = vld [vmem:[%s5096_s6] ss:$0 sm:$0xff] }
  0xcc   :  { %v741_v41 = vadd.f32 %v740_v38, %v727_v35  ;;  %v781_v6 = vadd.f32 %v780_v50, %v767_v1  ;;  %v3329_v35 = vld [vmem:[%s5097_s7 + $0x64] sm:$0xf]  ;;  %v2734_v38 = vor.u32 %v3330_v33, %v2733_v32  ;;  %v3143_v32 = vld [vmem:[%s5099_s9 + $0x32c] sm:$0xf0]  ;;  %v2945_v33 = vld [vmem:[%s5099_s9 + $0x188] sm:$0xf] }
  0xcd   :  { %v2738_v39 = vor.u32 %v3329_v35, %v2735_v36  ;;  %v3325_v50 = vld [vmem:[%s5097_s7 + $0x44] sm:$0xf]  ;;  %v3382_v36 = vld [vmem:[%s5099_s9 + $0x18c] sm:$0xf] }
  0xce   :  { %v755_v42 = vadd.f32 %v754_v40, %v741_v41  ;;  %v2725_v40 = vld [vmem:[%s5097_s7 + $0x50] sm:$0xf]  ;;  %v3328_v41 = vld [vmem:[%s5097_s7 + $0x54] sm:$0xf0]  ;;  %1212 = vmatpush.bf16.msrb.mxu2 %v2734_v38  ;;  %v2722_v55 = vor.u32 %v3325_v50, %v2719_v51  ;;  %1979 = vmatpush.bf16.msra.mxu0 %v3170_v26  ;;  %v3385_v35 = vld [vmem:[%s5099_s9 + $0x1a0] sm:$0xf0] }
  0xcf   :  { %1226 = vmatpush.bf16.msra.mxu1 %v2738_v39  ;;  %v2947_v38 = vld [vmem:[%s5099_s9 + $0x1a4] sm:$0xf0]  ;;  %v3146_v39 = vor.u32 %v3431_v31, %v3143_v32  ;;  %v3375_v51 = vld [vmem:[%s5099_s9 + $0x154] sm:$0xf]  ;;  %v3350_v26 = vld [vmem:[%s5099_s9 + $0x88] sm:$0xf0] }
  0xd0   :  { %v857_v46 = vmax.f32 %v755_v42, 0.0  ;;  %v768_v58 = vpop.f32.mrf.mxu3  ;;  %v3327_v42 = vld [vmem:[%s5097_s7 + $0x54] sm:$0xf]  ;;  %v3001_v31 = vld [vmem:[%s5099_s9 + $0x1f8] sm:$0xf] }
  0xd1   :  { %v769_v3 = vadd.f32 %v768_v58, %v162_v62  ;;  %v3399_v32 = vld [vmem:[%s5099_s9 + $0x210] sm:$0xf0] }
  0xd2   :  { %v859_v49 = vpack.c.bf16 %v857_v46, %v855_v45  ;;  %v2726_v45 = vor.u32 %v3328_v41, %v2725_v40  ;;  %v2730_v46 = vor.u32 %v3327_v42, %v2727_v43  ;;  %v2946_v40 = vor.u32 %v3385_v35, %v2945_v33  ;;  %v3113_v42 = vld [vmem:[%s5099_s9 + $0x2d8] sm:$0xf]  ;;  %v3427_v43 = vld [vmem:[%s5099_s9 + $0x2f0] sm:$0xf0]  ;;  %1980 = vmatpush.bf16.msra.mxu0 %v3142_v34  ;;  %v3396_v33 = vld [vmem:[%s5099_s9 + $0x1fc] sm:$0xf] }
  0xd3   :  { %v782_v56 = vpop.f32.mrf.mxu2  ;;  %v2950_v41 = vor.u32 %v3382_v36, %v2947_v38  ;;  %v3003_v34 = vld [vmem:[%s5099_s9 + $0x214] sm:$0xf0]  ;;  %v2806_v35 = vor.u32 %v3350_v26, %v2805_v24  ;;  %v2810_v36 = vor.u32 %v3347_v27, %v2807_v28  ;;  %v3123_v24 = vld [vmem:[%s5099_s9 + $0x2fc] sm:$0xf0] }
  0xd4   :  { %1001 = vmatmul.bf16.vlgmr.msrb.gmra.mxu1 %v859_v49  ;;  %v783_v7 = vadd.f32 %v782_v56, %v769_v3  ;;  %v3326_v49 = vld [vmem:[%s5097_s7 + $0x44] sm:$0xf0]  ;;  %1213 = vmatpush.bf16.msrb.mxu2 %v2726_v45  ;;  %v3424_v45 = vld [vmem:[%s5099_s9 + $0x2dc] sm:$0xf]  ;;  %v2777_v38 = vld [vmem:[%s5099_s9 + $0x38] sm:$0xf] }
  0xd5   :  { %v2718_v53 = vor.u32 %v3326_v49, %v2717_v47  ;;  %1227 = vmatpush.bf16.msra.mxu1 %v2730_v46  ;;  %v3115_v46 = vld [vmem:[%s5099_s9 + $0x2f4] sm:$0xf0]  ;;  %v2917_v47 = vld [vmem:[%s5099_s9 + $0x150] sm:$0xf]  ;;  %v3378_v49 = vld [vmem:[%s5099_s9 + $0x168] sm:$0xf0]  ;;  %1965 = vmatpush.bf16.msra.mxu3 %v2946_v40 }
  0xd6   :  { %v2918_v50 = vor.u32 %v3378_v49, %v2917_v47  ;;  %v3343_v40 = vld [vmem:[%s5099_s9 + $0x50] sm:$0xf0]  ;;  %v3392_v47 = vld [vmem:[%s5099_s9 + $0x1d8] sm:$0xf0]  ;;  %v3389_v49 = vld [vmem:[%s5099_s9 + $0x1c4] sm:$0xf] }
  0xd8   :  { %1214 = vmatpush.bf16.msrb.mxu2 %v2718_v53  ;;  %v3114_v53 = vor.u32 %v3427_v43, %v3113_v42  ;;  %v2779_v42 = vld [vmem:[%s5099_s9 + $0x54] sm:$0xf0] }
  0xd9   :  { %1228 = vmatpush.bf16.msra.mxu1 %v2722_v55  ;;  %1966 = vmatpush.bf16.msra.mxu3 %v2918_v50 }
  0xda   :  { %1981 = vmatpush.bf16.msra.mxu0 %v3114_v53  ;;  %v3442_v53 = vld [vmem:[%s5099_s9 + $0x368] sm:$0xf0] }
  0xe0   :  { %v794_v59 = vpop.f32.mrf.mxu0 }
  0xe1   :  { %v795_v8 = vadd.f32 %v794_v59, %v781_v6  ;;  %v2709_v6 = vld [vmem:[%s5097_s7 + $0x30] sm:$0xf] }
  0xe3   :  { %v808_v0 = vpop.f32.mrf.mxu1 }
  0xe4   :  { %v809_v63 = vadd.f32 %v808_v0, %v795_v8 }
  0xe8   :  { %v822_v2 = vpop.f32.mrf.mxu3  ;;  %v796_v4 = vpop.f32.mrf.mxu0 }
  0xe9   :  { %v797_v54 = vadd.f32 %v796_v4, %v783_v7  ;;  %v823_v60 = vadd.f32 %v822_v2, %v809_v63  ;;  %v3324_v4 = vld [vmem:[%s5097_s7 + $0x34] sm:$0xf0]  ;;  %v3323_v7 = vld [vmem:[%s5097_s7 + $0x34] sm:$0xf]  ;;  %v2701_v63 = vld [vmem:[%s5097_s7 + $0x20] sm:$0xf] }
  0xea   :  { %v2710_v8 = vor.u32 %v3324_v4, %v2709_v6  ;;  %v2861_v6 = vld [vmem:[%s5099_s9 + $0xe0] sm:$0xf] }
  0xeb   :  { %v836_v61 = vpop.f32.mrf.mxu2  ;;  %v810_v37 = vpop.f32.mrf.mxu1 }
  0xec   :  { %v811_v10 = vadd.f32 %v810_v37, %v797_v54  ;;  %v837_v12 = vadd.f32 %v836_v61, %v823_v60  ;;  %v2711_v54 = vld [vmem:[%s5097_s7 + $0x38] sm:$0xf0]  ;;  %1215 = vmatpush.bf16.msrb.mxu2 %v2710_v8  ;;  %v3361_v8 = vld [vmem:[%s5099_s9 + $0xe4] sm:$0xf] }
  0xed   :  { %v2714_v37 = vor.u32 %v3323_v7, %v2711_v54  ;;  %v3364_v7 = vld [vmem:[%s5099_s9 + $0xf8] sm:$0xf0]  ;;  %v2863_v54 = vld [vmem:[%s5099_s9 + $0xfc] sm:$0xf0] }
  0xef   :  { %1229 = vmatpush.bf16.msra.mxu1 %v2714_v37 }
  0xf0   :  { %v824_v48 = vpop.f32.mrf.mxu3 }
  0xf1   :  { %v825_v11 = vadd.f32 %v824_v48, %v811_v10  ;;  %v3322_v48 = vld [vmem:[%s5097_s7 + $0x24] sm:$0xf0]  ;;  %v2703_v10 = vld [vmem:[%s5097_s7 + $0x28] sm:$0xf0] }
  0xf2   :  { %v2702_v60 = vor.u32 %v3322_v48, %v2701_v63  ;;  %v3057_v63 = vld [vmem:[%s5099_s9 + $0x268] sm:$0xf]  ;;  %v3413_v48 = vld [vmem:[%s5099_s9 + $0x280] sm:$0xf0] }
  0xf3   :  { %v838_v5 = vpop.f32.mrf.mxu2 }
  0xf4   :  { %v839_v13 = vadd.f32 %v838_v5, %v825_v11  ;;  %1216 = vmatpush.bf16.msrb.mxu2 %v2702_v60  ;;  %v3059_v60 = vld [vmem:[%s5099_s9 + $0x284] sm:$0xf0] }
  0xfb   :  { %v850_v44 = vpop.f32.mrf.mxu2 }
  0xfc   :  { %v851_v9 = vadd.f32 %v850_v44, %v837_v12  ;;  %v3321_v44 = vld [vmem:[%s5097_s7 + $0x24] sm:$0xf]  ;;  %v2693_v12 = vld [vmem:[%s5097_s7 + $0x10] sm:$0xf] }
  0xfd   :  { %v2706_v11 = vor.u32 %v3321_v44, %v2703_v10  ;;  %v3410_v44 = vld [vmem:[%s5099_s9 + $0x26c] sm:$0xf]  ;;  %v2862_v10 = vor.u32 %v3364_v7, %v2861_v6  ;;  %v2953_v6 = vld [vmem:[%s5099_s9 + $0x190] sm:$0xf] }
  0xfe   :  { %v856_v16 = vmax.f32 %v851_v9, 0.0  ;;  %v3319_v9 = vld [vmem:[%s5097_s7 + $0x14] sm:$0xf] }
  0xff   :  { %1230 = vmatpush.bf16.msra.mxu1 %v2706_v11  ;;  %v2866_v11 = vor.u32 %v3361_v8, %v2863_v54  ;;  %v3383_v54 = vld [vmem:[%s5099_s9 + $0x194] sm:$0xf] }
 0x103   :  { %v852_v14 = vpop.f32.mrf.mxu2 }
 0x104   :  { %v853_v15 = vadd.f32 %v852_v14, %v839_v13  ;;  %v3320_v13 = vld [vmem:[%s5097_s7 + $0x14] sm:$0xf0] }
 0x105   :  { %v2694_v14 = vor.u32 %v3320_v13, %v2693_v12  ;;  %v2833_v12 = vld [vmem:[%s5099_s9 + $0xa8] sm:$0xf]  ;;  %v3058_v13 = vor.u32 %v3413_v48, %v3057_v63 }
 0x106   :  { %v858_v17 = vmax.f32 %v853_v15, 0.0  ;;  %v2695_v15 = vld [vmem:[%s5097_s7 + $0x18] sm:$0xf0] }
 0x107   :  { %1217 = vmatpush.bf16.msrb.mxu2 %v2694_v14  ;;  %v3354_v14 = vld [vmem:[%s5099_s9 + $0xac] sm:$0xf] }
 0x108   :  { %v860_v18 = vpack.c.bf16 %v858_v17, %v856_v16  ;;  %v2698_v16 = vor.u32 %v3319_v9, %v2695_v15  ;;  %v2685_v17 = vld [vmem:[%s5097_s7] sm:$0xf]  ;;  %v3357_v9 = vld [vmem:[%s5099_s9 + $0xc0] sm:$0xf0]  ;;  %v2835_v15 = vld [vmem:[%s5099_s9 + $0xc4] sm:$0xf0] }
 0x109   :  { %v2838_v23 = vor.u32 %v3354_v14, %v2835_v15  ;;  %v2925_v15 = vld [vmem:[%s5099_s9 + $0x158] sm:$0xf] }
 0x10a   :  { %1015 = vmatmul.bf16.vlgmr.msrb.gmra.mxu3 %v860_v18  ;;  %1231 = vmatpush.bf16.msra.mxu1 %v2698_v16  ;;  %v3318_v18 = vld [vmem:[%s5097_s7 + $0x4] sm:$0xf0]  ;;  %v3062_v16 = vor.u32 %v3410_v44, %v3059_v60  ;;  %v3149_v44 = vld [vmem:[%s5099_s9 + $0x318] sm:$0xf]  ;;  %v3435_v60 = vld [vmem:[%s5099_s9 + $0x330] sm:$0xf0] }
 0x10b   :  { %v2686_v20 = vor.u32 %v3318_v18, %v2685_v17  ;;  %v3029_v17 = vld [vmem:[%s5099_s9 + $0x230] sm:$0xf]  ;;  %v3406_v18 = vld [vmem:[%s5099_s9 + $0x248] sm:$0xf0] }
 0x10c   :  { %v3030_v25 = vor.u32 %v3406_v18, %v3029_v17  ;;  %v3150_v17 = vor.u32 %v3435_v60, %v3149_v44  ;;  %v3376_v18 = vld [vmem:[%s5099_s9 + $0x15c] sm:$0xf]  ;;  %v2813_v44 = vld [vmem:[%s5099_s9 + $0x78] sm:$0xf]  ;;  %v3351_v60 = vld [vmem:[%s5099_s9 + $0x90] sm:$0xf0] }
 0x10d   :  { %1218 = vmatpush.bf16.msrb.mxu2 %v2686_v20  ;;  %v3403_v20 = vld [vmem:[%s5099_s9 + $0x234] sm:$0xf] }
 0x10e   :  { %1232 = vmatpush.bf16.msra.mxu1 %v2690_v22  ;;  %v2834_v22 = vor.u32 %v3357_v9, %v2833_v12  ;;  %v3151_v12 = vld [vmem:[%s5099_s9 + $0x334] sm:$0xf0] }
 0x111   :  { %1993 = vmatpush.bf16.msra.mxu2 %v2950_v41  ;;  %v3340_v41 = vld [vmem:[%s5099_s9 + $0x3c] sm:$0xf] }
 0x112   :  { %2007 = vmatpush.bf16.msrb.mxu1 %v3174_v30  ;;  %v3034_v30 = vor.u32 %v3403_v20, %v3031_v21  ;;  %v3121_v21 = vld [vmem:[%s5099_s9 + $0x2e0] sm:$0xf] }
 0x116   :  { %2008 = vmatpush.bf16.msrb.mxu1 %v3146_v39  ;;  %v3002_v39 = vor.u32 %v3399_v32, %v3001_v31  ;;  %v3418_v31 = vld [vmem:[%s5099_s9 + $0x2ac] sm:$0xf]  ;;  %v3095_v32 = vld [vmem:[%s5099_s9 + $0x2c4] sm:$0xf0] }
 0x151   :  { %v1002_v52 = vpop.f32.mrf.mxu1 }
 0x152   :  { %v1003_v59 = vadd.f32 %v3448_v57, %v1002_v52  ;;  %v2919_v52 = vld [vmem:[%s5099_s9 + $0x16c] sm:$0xf0] }
 0x153   :  { %v2922_v55 = vor.u32 %v3375_v51, %v2919_v52  ;;  %v2975_v51 = vld [vmem:[%s5099_s9 + $0x1dc] sm:$0xf0]  ;;  %v3177_v52 = vld [vmem:[%s5099_s9 + $0x350] sm:$0xf] }
 0x154   :  { %v2978_v7 = vor.u32 %v3389_v49, %v2975_v51  ;;  %v3178_v8 = vor.u32 %v3442_v53, %v3177_v52  ;;  %v3365_v51 = vld [vmem:[%s5099_s9 + $0x100] sm:$0xf0]  ;;  %v3362_v53 = vld [vmem:[%s5099_s9 + $0xec] sm:$0xf] }
 0x155   :  { %1994 = vmatpush.bf16.msra.mxu2 %v2922_v55 }
 0x159   :  { %v1004_v58 = vpop.f32.mrf.mxu1 }
 0x15a   :  { %v1005_v61 = vadd.f32 %v3448_v57, %v1004_v58  ;;  %v3420_v57 = vld [vmem:[%s5099_s9 + $0x2b8] sm:$0xf0]  ;;  %v3118_v58 = vor.u32 %v3424_v45, %v3115_v46  ;;  %v3006_v45 = vor.u32 %v3396_v33, %v3003_v34  ;;  %v2973_v46 = vld [vmem:[%s5099_s9 + $0x1c0] sm:$0xf]  ;;  %v3098_v34 = vor.u32 %v3418_v31, %v3095_v32 }
 0x15b   :  { %v1125_v31 = vld [vmem:[%s5098_s8] sm:$0x3] }
 0x15c   :  { %2009 = vmatpush.bf16.msrb.mxu1 %v3118_v58  ;;  %v3179_v58 = vld [vmem:[%s5099_s9 + $0x36c] sm:$0xf0] }
 0x18d   :  { %v1016_v56 = vpop.f32.mrf.mxu3 }
 0x18e   :  { %v1017_v62 = vadd.f32 %v1016_v56, %v1003_v59  ;;  %v3085_v56 = vld [vmem:[%s5099_s9 + $0x2a0] sm:$0xf]  ;;  %v2889_v59 = vld [vmem:[%s5099_s9 + $0x118] sm:$0xf] }
 0x18f   :  { %v3086_v4 = vor.u32 %v3420_v57, %v3085_v56  ;;  %v2778_v56 = vor.u32 %v3343_v40, %v2777_v38  ;;  %v3439_v57 = vld [vmem:[%s5099_s9 + $0x354] sm:$0xf]  ;;  %v2899_v40 = vld [vmem:[%s5099_s9 + $0x13c] sm:$0xf0] }
 0x190   :  { %v1021_v2 = vmax.f32 %v1017_v62, 0.0  ;;  %v3368_v62 = vld [vmem:[%s5099_s9 + $0x11c] sm:$0xf]  ;;  %v3182_v48 = vor.u32 %v3439_v57, %v3179_v58  ;;  %v3037_v57 = vld [vmem:[%s5099_s9 + $0x238] sm:$0xf] }
 0x191   :  { %1982 = vmatpush.bf16.msra.mxu0 %v3086_v4  ;;  %v3386_v4 = vld [vmem:[%s5099_s9 + $0x1a8] sm:$0xf0]  ;;  %v3407_v58 = vld [vmem:[%s5099_s9 + $0x250] sm:$0xf0] }
 0x192   :  { %v2954_v9 = vor.u32 %v3386_v4, %v2953_v6  ;;  %v2843_v6 = vld [vmem:[%s5099_s9 + $0xcc] sm:$0xf0] }
 0x195   :  { %v1018_v0 = vpop.f32.mrf.mxu3  ;;  %1983 = vmatpush.bf16.msra.mxu0 %v3058_v13 }
 0x196   :  { %v1019_v1 = vadd.f32 %v1018_v0, %v1005_v61  ;;  %v3371_v61 = vld [vmem:[%s5099_s9 + $0x130] sm:$0xf0]  ;;  %v3417_v0 = vld [vmem:[%s5099_s9 + $0x2a4] sm:$0xf] }
 0x198   :  { %v1022_v3 = vmax.f32 %v1019_v1, 0.0  ;;  %v3087_v1 = vld [vmem:[%s5099_s9 + $0x2bc] sm:$0xf0] }
 0x199   :  { %v3090_v37 = vor.u32 %v3417_v0, %v3087_v1  ;;  %1984 = vmatpush.bf16.msra.mxu0 %v3030_v25  ;;  %v3336_v0 = vld [vmem:[%s5099_s9 + $0x18] sm:$0xf0]  ;;  %v3333_v1 = vld [vmem:[%s5099_s9 + $0x4] sm:$0xf] }
 0x19a   :  { %v1023_v5 = vpack.c.bf16 %v1022_v3, %v1021_v2  ;;  %v2891_v2 = vld [vmem:[%s5099_s9 + $0x134] sm:$0xf0]  ;;  %v2890_v3 = vor.u32 %v3371_v61, %v2889_v59  ;;  %v2782_v59 = vor.u32 %v3340_v41, %v2779_v42  ;;  %v2749_v61 = vld [vmem:[%s5099_s9] sm:$0xf]  ;;  %v3065_v42 = vld [vmem:[%s5099_s9 + $0x270] sm:$0xf] }
 0x19b   :  { %2010 = vmatpush.bf16.msrb.mxu1 %v3090_v37  ;;  %v2955_v37 = vld [vmem:[%s5099_s9 + $0x1ac] sm:$0xf0] }
 0x19c   :  { %1100 = vmatmul.bf16.vlgmr.msrb.gmra.mxu0 %v1023_v5  ;;  %v2894_v5 = vor.u32 %v3368_v62, %v2891_v2  ;;  %1967 = vmatpush.bf16.msra.mxu3 %v2890_v3  ;;  %v2974_v62 = vor.u32 %v3392_v47, %v2973_v46  ;;  %v2751_v2 = vld [vmem:[%s5099_s9 + $0x1c] sm:$0xf0]  ;;  %v2958_v14 = vor.u32 %v3383_v54, %v2955_v37  ;;  %v3411_v46 = vld [vmem:[%s5099_s9 + $0x274] sm:$0xf]  ;;  %v3067_v47 = vld [vmem:[%s5099_s9 + $0x28c] sm:$0xf0] }
 0x19d   :  { %1985 = vmatpush.bf16.msra.mxu0 %v3002_v39  ;;  %v2754_v13 = vor.u32 %v3333_v1, %v2751_v2  ;;  %v3369_v39 = vld [vmem:[%s5099_s9 + $0x124] sm:$0xf]  ;;  %v3070_v49 = vor.u32 %v3411_v46, %v3067_v47  ;;  %v2841_v1 = vld [vmem:[%s5099_s9 + $0xb0] sm:$0xf]  ;;  %v3358_v2 = vld [vmem:[%s5099_s9 + $0xc8] sm:$0xf0] }
 0x19e   :  { %1995 = vmatpush.bf16.msra.mxu2 %v2894_v5  ;;  %v2902_v41 = vor.u32 %v3369_v39, %v2899_v40  ;;  %v3397_v37 = vld [vmem:[%s5099_s9 + $0x204] sm:$0xf]  ;;  %v3185_v39 = vld [vmem:[%s5099_s9 + $0x358] sm:$0xf] }
 0x19f   :  { %2011 = vmatpush.bf16.msrb.mxu1 %v3062_v16  ;;  %v3379_v16 = vld [vmem:[%s5099_s9 + $0x170] sm:$0xf0] }
 0x1a0   :  { %1968 = vmatpush.bf16.msra.mxu3 %v2862_v10  ;;  %v2750_v10 = vor.u32 %v3336_v0, %v2749_v61  ;;  %v2926_v25 = vor.u32 %v3379_v16, %v2925_v15  ;;  %v3404_v61 = vld [vmem:[%s5099_s9 + $0x23c] sm:$0xf]  ;;  %v3390_v16 = vld [vmem:[%s5099_s9 + $0x1cc] sm:$0xf] }
 0x1a1   :  { %1986 = vmatpush.bf16.msra.mxu0 %v2974_v62  ;;  %v3039_v62 = vld [vmem:[%s5099_s9 + $0x254] sm:$0xf0] }
 0x1a2   :  { %1996 = vmatpush.bf16.msra.mxu2 %v2866_v11  ;;  %v3432_v11 = vld [vmem:[%s5099_s9 + $0x31c] sm:$0xf]  ;;  %v3042_v0 = vor.u32 %v3404_v61, %v3039_v62  ;;  %v3387_v61 = vld [vmem:[%s5099_s9 + $0x1b0] sm:$0xf0] }
 0x1a3   :  { %2012 = vmatpush.bf16.msrb.mxu1 %v3034_v30  ;;  %v3154_v20 = vor.u32 %v3432_v11, %v3151_v12  ;;  %v3421_v30 = vld [vmem:[%s5099_s9 + $0x2c0] sm:$0xf0]  ;;  %v3348_v11 = vld [vmem:[%s5099_s9 + $0x7c] sm:$0xf]  ;;  %v2815_v12 = vld [vmem:[%s5099_s9 + $0x94] sm:$0xf0] }
 0x1a4   :  { %1969 = vmatpush.bf16.msra.mxu3 %v2834_v22  ;;  %v3428_v22 = vld [vmem:[%s5099_s9 + $0x2f8] sm:$0xf0] }
 0x1a5   :  { %2035 = vmatpush.bf16.msrb.mxu0 %v3178_v8  ;;  %v3122_v27 = vor.u32 %v3428_v22, %v3121_v21  ;;  %v3400_v8 = vld [vmem:[%s5099_s9 + $0x218] sm:$0xf0]  ;;  %v3341_v22 = vld [vmem:[%s5099_s9 + $0x44] sm:$0xf] }
 0x1a6   :  { %1997 = vmatpush.bf16.msra.mxu2 %v2838_v23  ;;  %v3425_v23 = vld [vmem:[%s5099_s9 + $0x2e4] sm:$0xf]  ;;  %v3384_v62 = vld [vmem:[%s5099_s9 + $0x19c] sm:$0xf] }
 0x1a7   :  { %2013 = vmatpush.bf16.msrb.mxu1 %v3006_v45  ;;  %v3126_v28 = vor.u32 %v3425_v23, %v3123_v24  ;;  %v2787_v23 = vld [vmem:[%s5099_s9 + $0x5c] sm:$0xf0] }
 0x1a8   :  { %1970 = vmatpush.bf16.msra.mxu3 %v2806_v35  ;;  %v2897_v35 = vld [vmem:[%s5099_s9 + $0x120] sm:$0xf]  ;;  %v2790_v24 = vor.u32 %v3341_v22, %v2787_v23 }
 0x1a9   :  { %2036 = vmatpush.bf16.msrb.mxu0 %v3150_v17  ;;  %v2983_v17 = vld [vmem:[%s5099_s9 + $0x1e4] sm:$0xf0] }
 0x1aa   :  { %1998 = vmatpush.bf16.msra.mxu2 %v2810_v36  ;;  %v3372_v36 = vld [vmem:[%s5099_s9 + $0x138] sm:$0xf0] }
 0x1ab   :  { %2014 = vmatpush.bf16.msrb.mxu1 %v2978_v7  ;;  %v2898_v38 = vor.u32 %v3372_v36, %v2897_v35  ;;  %v3009_v7 = vld [vmem:[%s5099_s9 + $0x200] sm:$0xf]  ;;  %v1127_v36 = vperm.slane %v1125_v31, 0 }
 0x1ac   :  { %1971 = vmatpush.bf16.msra.mxu3 %v2778_v56  ;;  %v3010_v54 = vor.u32 %v3400_v8, %v3009_v7  ;;  %v3426_v7 = vld [vmem:[%s5099_s9 + $0x2ec] sm:$0xf]  ;;  %v3131_v8 = vld [vmem:[%s5099_s9 + $0x304] sm:$0xf0] }
 0x1ad   :  { %2037 = vmatpush.bf16.msrb.mxu0 %v3122_v27 }
 0x1ae   :  { %1999 = vmatpush.bf16.msra.mxu2 %v2782_v59  ;;  %v3038_v59 = vor.u32 %v3407_v58, %v3037_v57  ;;  %v2961_v58 = vld [vmem:[%s5099_s9 + $0x198] sm:$0xf] }
 0x1b0   :  { %1972 = vmatpush.bf16.msra.mxu3 %v2750_v10  ;;  %v2814_v10 = vor.u32 %v3351_v60, %v2813_v44  ;;  %v3380_v44 = vld [vmem:[%s5099_s9 + $0x178] sm:$0xf0]  ;;  %v3377_v60 = vld [vmem:[%s5099_s9 + $0x164] sm:$0xf] }
 0x1b2   :  { %2000 = vmatpush.bf16.msra.mxu2 %v2754_v13  ;;  %v2818_v13 = vor.u32 %v3348_v11, %v2815_v12  ;;  %v3134_v12 = vor.u32 %v3426_v7, %v3131_v8 }
 0x1b4   :  { %2021 = vmatpush.bf16.msrb.mxu3 %v2954_v9  ;;  %v2981_v9 = vld [vmem:[%s5099_s9 + $0x1c8] sm:$0xf] }
 0x1b8   :  { %2022 = vmatpush.bf16.msrb.mxu3 %v2926_v25  ;;  %v2757_v25 = vld [vmem:[%s5099_s9 + $0x8] sm:$0xf] }
 0x1bc   :  { %2023 = vmatpush.bf16.msrb.mxu3 %v2898_v38 }
 0x219   :  { %v1101_v19 = vpop.f32.mrf.mxu0 }
 0x21a   :  { %v1102_v43 = vadd.f32 %v3449_v29, %v1101_v19  ;;  %v2927_v19 = vld [vmem:[%s5099_s9 + $0x174] sm:$0xf0] }
 0x21b   :  { %v2930_v26 = vor.u32 %v3376_v18, %v2927_v19  ;;  %v2986_v18 = vor.u32 %v3390_v16, %v2983_v17  ;;  %v2785_v19 = vld [vmem:[%s5099_s9 + $0x40] sm:$0xf] }
 0x21c   :  { %v1106_v3 = vmax.f32 %v1102_v43, 0.0  ;;  %v3414_v43 = vld [vmem:[%s5099_s9 + $0x288] sm:$0xf0] }
 0x21d   :  { %v3066_v45 = vor.u32 %v3414_v43, %v3065_v42  ;;  %v3440_v42 = vld [vmem:[%s5099_s9 + $0x35c] sm:$0xf]  ;;  %v3187_v43 = vld [vmem:[%s5099_s9 + $0x374] sm:$0xf0] }
 0x221   :  { %v1103_v50 = vpop.f32.mrf.mxu0 }
 0x222   :  { %v1104_v55 = vadd.f32 %v3449_v29, %v1103_v50  ;;  %v3093_v29 = vld [vmem:[%s5099_s9 + $0x2a8] sm:$0xf] }
 0x223   :  { %v3094_v33 = vor.u32 %v3421_v30, %v3093_v29  ;;  %v2869_v50 = vld [vmem:[%s5099_s9 + $0xe8] sm:$0xf] }
 0x224   :  { %v1107_v5 = vmax.f32 %v1104_v55, 0.0  ;;  %v2870_v52 = vor.u32 %v3365_v51, %v2869_v50  ;;  %v2871_v55 = vld [vmem:[%s5099_s9 + $0x104] sm:$0xf0]  ;;  %v3157_v50 = vld [vmem:[%s5099_s9 + $0x320] sm:$0xf] }
 0x225   :  { %2038 = vmatpush.bf16.msrb.mxu0 %v3094_v33  ;;  %v2874_v56 = vor.u32 %v3362_v53, %v2871_v55  ;;  %v2759_v29 = vld [vmem:[%s5099_s9 + $0x24] sm:$0xf0]  ;;  %v1128_v33 = vperm.slane %v1125_v31, 1  ;;  %v3436_v53 = vld [vmem:[%s5099_s9 + $0x338] sm:$0xf0] }
 0x226   :  { %v1108_v63 = vpack.c.bf16 %v1107_v5, %v1106_v3  ;;  %2024 = vmatpush.bf16.msrb.mxu3 %v2870_v52  ;;  %v2842_v3 = vor.u32 %v3358_v2, %v2841_v1  ;;  %v3355_v5 = vld [vmem:[%s5099_s9 + $0xb4] sm:$0xf]  ;;  %v3433_v55 = vld [vmem:[%s5099_s9 + $0x324] sm:$0xf]  ;;  %v3158_v1 = vor.u32 %v3436_v53, %v3157_v50  ;;  %v3366_v31 = vld [vmem:[%s5099_s9 + $0x108] sm:$0xf0] }
 0x227   :  { %v2846_v4 = vor.u32 %v3355_v5, %v2843_v6  ;;  %v3429_v5 = vld [vmem:[%s5099_s9 + $0x300] sm:$0xf0] }
 0x228   :  { %1219 = vmatmul.bf16.vlgmr.msrb.gmra.mxu2 %v1108_v63  ;;  %1233 = vmatmul.bf16.vlgmr.msra.gmra.mxu1 %v1108_v63  ;;  %v3011_v63 = vld [vmem:[%s5099_s9 + $0x21c] sm:$0xf0]  ;;  %v3401_v53 = vld [vmem:[%s5099_s9 + $0x220] sm:$0xf0] }
 0x229   :  { %2063 = vmatpush.bf16.msra.mxu1 %v3182_v48  ;;  %2049 = vmatpush.bf16.msrb.mxu2 %v2958_v14  ;;  %v3014_v48 = vor.u32 %v3397_v37, %v3011_v63  ;;  %v3393_v14 = vld [vmem:[%s5099_s9 + $0x1e0] sm:$0xf0]  ;;  %v2933_v63 = vld [vmem:[%s5099_s9 + $0x160] sm:$0xf] }
 0x22a   :  { %2039 = vmatpush.bf16.msrb.mxu0 %v3066_v45  ;;  %2025 = vmatpush.bf16.msrb.mxu3 %v2842_v3  ;;  %v2982_v15 = vor.u32 %v3393_v14, %v2981_v9  ;;  %v3129_v3 = vld [vmem:[%s5099_s9 + $0x2e8] sm:$0xf]  ;;  %v3422_v9 = vld [vmem:[%s5099_s9 + $0x2c8] sm:$0xf0]  ;;  %v3419_v14 = vld [vmem:[%s5099_s9 + $0x2b4] sm:$0xf]  ;;  %v2934_v16 = vor.u32 %v3380_v44, %v2933_v63 }
 0x22b   :  { %v3130_v11 = vor.u32 %v3429_v5, %v3129_v3  ;;  %v2989_v3 = vld [vmem:[%s5099_s9 + $0x1d0] sm:$0xf]  ;;  %v3394_v5 = vld [vmem:[%s5099_s9 + $0x1e8] sm:$0xf0]  ;;  %v2793_v63 = vld [vmem:[%s5099_s9 + $0x48] sm:$0xf] }
 0x22c   :  { %v3345_v44 = vld [vmem:[%s5099_s9 + $0x60] sm:$0xf0] }
 0x22d   :  { %2064 = vmatpush.bf16.msra.mxu1 %v3154_v20  ;;  %2050 = vmatpush.bf16.msrb.mxu2 %v2930_v26  ;;  %v3344_v20 = vld [vmem:[%s5099_s9 + $0x58] sm:$0xf0]  ;;  %v3337_v26 = vld [vmem:[%s5099_s9 + $0x20] sm:$0xf0] }
 0x22e   :  { %2040 = vmatpush.bf16.msrb.mxu0 %v3038_v59  ;;  %2026 = vmatpush.bf16.msrb.mxu3 %v2814_v10  ;;  %v2786_v21 = vor.u32 %v3344_v20, %v2785_v19  ;;  %v2758_v27 = vor.u32 %v3337_v26, %v2757_v25  ;;  %v2935_v10 = vld [vmem:[%s5099_s9 + $0x17c] sm:$0xf0]  ;;  %v3373_v19 = vld [vmem:[%s5099_s9 + $0x140] sm:$0xf0]  ;;  %v3370_v20 = vld [vmem:[%s5099_s9 + $0x12c] sm:$0xf] }
 0x22f   :  { %v2938_v17 = vor.u32 %v3377_v60, %v2935_v10  ;;  %v3415_v25 = vld [vmem:[%s5099_s9 + $0x290] sm:$0xf0]  ;;  %v3412_v26 = vld [vmem:[%s5099_s9 + $0x27c] sm:$0xf]  ;;  %v3342_v60 = vld [vmem:[%s5099_s9 + $0x4c] sm:$0xf] }
 0x230   :  { %v2795_v10 = vld [vmem:[%s5099_s9 + $0x64] sm:$0xf0] }
 0x231   :  { %2065 = vmatpush.bf16.msra.mxu1 %v3126_v28  ;;  %2051 = vmatpush.bf16.msrb.mxu2 %v2902_v41  ;;  %v3334_v28 = vld [vmem:[%s5099_s9 + $0xc] sm:$0xf]  ;;  %v3443_v41 = vld [vmem:[%s5099_s9 + $0x370] sm:$0xf0] }
 0x232   :  { %2041 = vmatpush.bf16.msrb.mxu0 %v3010_v54  ;;  %2027 = vmatpush.bf16.msrb.mxu3 %v2786_v21  ;;  %v2762_v30 = vor.u32 %v3334_v28, %v2759_v29  ;;  %v3186_v47 = vor.u32 %v3443_v41, %v3185_v39  ;;  %v2962_v54 = vor.u32 %v3387_v61, %v2961_v58  ;;  %v2907_v21 = vld [vmem:[%s5099_s9 + $0x144] sm:$0xf0]  ;;  %v3405_v39 = vld [vmem:[%s5099_s9 + $0x244] sm:$0xf]  ;;  %v3352_v61 = vld [vmem:[%s5099_s9 + $0x98] sm:$0xf0] }
 0x233   :  { %v2910_v29 = vor.u32 %v3370_v20, %v2907_v21  ;;  %v2767_v20 = vld [vmem:[%s5099_s9 + $0x2c] sm:$0xf0]  ;;  %v2969_v21 = vld [vmem:[%s5099_s9 + $0x1a0] sm:$0xf] }
 0x235   :  { %2066 = vmatpush.bf16.msra.mxu1 %v3098_v34  ;;  %2052 = vmatpush.bf16.msrb.mxu2 %v2874_v56  ;;  %v3159_v56 = vld [vmem:[%s5099_s9 + $0x33c] sm:$0xf0] }
 0x236   :  { %2042 = vmatpush.bf16.msrb.mxu0 %v2982_v15  ;;  %2028 = vmatpush.bf16.msrb.mxu3 %v2758_v27  ;;  %v3162_v2 = vor.u32 %v3433_v55, %v3159_v56  ;;  %v3103_v15 = vld [vmem:[%s5099_s9 + $0x2cc] sm:$0xf0]  ;;  %v3075_v27 = vld [vmem:[%s5099_s9 + $0x294] sm:$0xf0]  ;;  %v3398_v55 = vld [vmem:[%s5099_s9 + $0x20c] sm:$0xf] }
 0x237   :  { %v3106_v23 = vor.u32 %v3419_v14, %v3103_v15  ;;  %v3019_v56 = vld [vmem:[%s5099_s9 + $0x224] sm:$0xf0]  ;;  %v2798_v14 = vor.u32 %v3342_v60, %v2795_v10 }
 0x238   :  { %v3165_v15 = vld [vmem:[%s5099_s9 + $0x328] sm:$0xf] }
 0x239   :  { %2067 = vmatpush.bf16.msra.mxu1 %v3070_v49  ;;  %2053 = vmatpush.bf16.msrb.mxu2 %v2846_v4  ;;  %v3190_v49 = vor.u32 %v3440_v42, %v3187_v43  ;;  %v2849_v43 = vld [vmem:[%s5099_s9 + $0xb8] sm:$0xf] }
 0x23d   :  { %2068 = vmatpush.bf16.msra.mxu1 %v3042_v0  ;;  %2054 = vmatpush.bf16.msrb.mxu2 %v2818_v13  ;;  %v2963_v0 = vld [vmem:[%s5099_s9 + $0x1b4] sm:$0xf0]  ;;  %v3101_v13 = vld [vmem:[%s5099_s9 + $0x2b0] sm:$0xf] }
 0x23e   :  { %v2966_v37 = vor.u32 %v3384_v62, %v2963_v0  ;;  %v3102_v22 = vor.u32 %v3422_v9, %v3101_v13  ;;  %v3349_v62 = vld [vmem:[%s5099_s9 + $0x84] sm:$0xf]  ;;  %v2823_v0 = vld [vmem:[%s5099_s9 + $0x9c] sm:$0xf0]  ;;  %v2794_v9 = vor.u32 %v3345_v44, %v2793_v63 }
 0x23f   :  { %v2826_v8 = vor.u32 %v3349_v62, %v2823_v0  ;;  %v2997_v62 = vld [vmem:[%s5099_s9 + $0x1d8] sm:$0xf]  ;;  %v3395_v0 = vld [vmem:[%s5099_s9 + $0x1f0] sm:$0xf0]  ;;  %v5076_v63 = vld [vmem:[%s5100_s10] sm:$0x7f] }
 0x240   :  { %v1375_v44 = vperm.slane %v5076_v63, 0  ;;  %v1376_v60 = vperm.slane %v5076_v63, 1 }
 0x241   :  { %2069 = vmatpush.bf16.msra.mxu1 %v3014_v48  ;;  %2055 = vmatpush.bf16.msrb.mxu2 %v2790_v24  ;;  %v3073_v24 = vld [vmem:[%s5099_s9 + $0x278] sm:$0xf] }
 0x245   :  { %2070 = vmatpush.bf16.msra.mxu1 %v2986_v18  ;;  %2056 = vmatpush.bf16.msrb.mxu2 %v2762_v30  ;;  %v2905_v18 = vld [vmem:[%s5099_s9 + $0x128] sm:$0xf]  ;;  %v2877_v30 = vld [vmem:[%s5099_s9 + $0xf0] sm:$0xf] }
 0x246   :  { %v2906_v28 = vor.u32 %v3373_v19, %v2905_v18  ;;  %v2878_v41 = vor.u32 %v3366_v31, %v2877_v30  ;;  %v3338_v18 = vld [vmem:[%s5099_s9 + $0x28] sm:$0xf0]  ;;  %v3335_v19 = vld [vmem:[%s5099_s9 + $0x14] sm:$0xf]  ;;  %v3381_v30 = vld [vmem:[%s5099_s9 + $0x180] sm:$0xf0] }
 0x2a5   :  { %v1234_v32 = vpop.f32.mrf.mxu1 }
 0x2a6   :  { %v1235_v35 = vadd.f32 %v1234_v32, %v1128_v33  ;;  %v3363_v32 = vld [vmem:[%s5099_s9 + $0xf4] sm:$0xf] }
 0x2a8   :  { %v1240_v45 = vmax.f32 %v1235_v35, 0.0  ;;  %v3078_v35 = vor.u32 %v3412_v26, %v3075_v27  ;;  %v3137_v26 = vld [vmem:[%s5099_s9 + $0x2f0] sm:$0xf]  ;;  %v3430_v27 = vld [vmem:[%s5099_s9 + $0x308] sm:$0xf0] }
 0x2a9   :  { %v3138_v31 = vor.u32 %v3430_v27, %v3137_v26 }
 0x2ab   :  { %v1220_v34 = vpop.f32.mrf.mxu2 }
 0x2ac   :  { %v1221_v51 = vadd.f32 %v1220_v34, %v1127_v36  ;;  %v3074_v34 = vor.u32 %v3415_v25, %v3073_v24  ;;  %v2770_v25 = vor.u32 %v3335_v19, %v2767_v20 }
 0x2ad   :  { %v1236_v38 = vpop.f32.mrf.mxu1 }
 0x2ae   :  { %v1237_v40 = vadd.f32 %v1236_v38, %v1128_v33  ;;  %v1239_v6 = vmax.f32 %v1221_v51, 0.0  ;;  %v2879_v33 = vld [vmem:[%s5099_s9 + $0x10c] sm:$0xf0]  ;;  %v3408_v38 = vld [vmem:[%s5099_s9 + $0x258] sm:$0xf0] }
 0x2af   :  { %v2882_v42 = vor.u32 %v3363_v32, %v2879_v33  ;;  %v3017_v51 = vld [vmem:[%s5099_s9 + $0x208] sm:$0xf]  ;;  %v3109_v32 = vld [vmem:[%s5099_s9 + $0x2b8] sm:$0xf]  ;;  %v3423_v33 = vld [vmem:[%s5099_s9 + $0x2d0] sm:$0xf0] }
 0x2b0   :  { %v1242_v46 = vmax.f32 %v1237_v40, 0.0  ;;  %v3047_v40 = vld [vmem:[%s5099_s9 + $0x25c] sm:$0xf0] }
 0x2b1   :  { %v3050_v50 = vor.u32 %v3405_v39, %v3047_v40  ;;  %v3081_v39 = vld [vmem:[%s5099_s9 + $0x280] sm:$0xf]  ;;  %v3416_v40 = vld [vmem:[%s5099_s9 + $0x298] sm:$0xf0] }
 0x2b2   :  { %v4782_v52 = vpack.c.bf16 %v1242_v46, %v1240_v45  ;;  %v3359_v45 = vld [vmem:[%s5099_s9 + $0xd0] sm:$0xf0]  ;;  %v3356_v46 = vld [vmem:[%s5099_s9 + $0xbc] sm:$0xf] }
 0x2b3   :  { %v1222_v57 = vpop.f32.mrf.mxu2 }
 0x2b4   :  { %v1223_v59 = vadd.f32 %v1222_v57, %v1127_v36  ;;  %1987 = vmatmul.bf16.vlgmr.msra.gmra.mxu0 %v4782_v52  ;;  %2015 = vmatmul.bf16.vlgmr.msrb.gmra.mxu1 %v4782_v52  ;;  %v3045_v36 = vld [vmem:[%s5099_s9 + $0x240] sm:$0xf]  ;;  %v2850_v57 = vor.u32 %v3359_v45, %v2849_v43  ;;  %v3367_v43 = vld [vmem:[%s5099_s9 + $0x110] sm:$0xf0]  ;;  %v3082_v45 = vor.u32 %v3416_v40, %v3081_v39  ;;  %v1379_v40 = vperm.slane %v5076_v63, 4 }
 0x2b5   :  { %2091 = vmatpush.bf16.msra.mxu0 %v3186_v47  ;;  %2119 = vmatpush.bf16.msrb.mxu1 %v3190_v49  ;;  %v2851_v47 = vld [vmem:[%s5099_s9 + $0xd4] sm:$0xf0]  ;;  %v3046_v49 = vor.u32 %v3408_v38, %v3045_v36  ;;  %v3374_v36 = vld [vmem:[%s5099_s9 + $0x148] sm:$0xf0]  ;;  %v3110_v38 = vor.u32 %v3423_v33, %v3109_v32 }
 0x2b6   :  { %v1241_v4 = vmax.f32 %v1223_v59, 0.0  ;;  %v2854_v58 = vor.u32 %v3356_v46, %v2851_v47  ;;  %v2821_v59 = vld [vmem:[%s5099_s9 + $0x80] sm:$0xf]  ;;  %v3053_v46 = vld [vmem:[%s5099_s9 + $0x248] sm:$0xf] }
 0x2b7   :  { %v2822_v7 = vor.u32 %v3352_v61, %v2821_v59  ;;  %v3409_v47 = vld [vmem:[%s5099_s9 + $0x260] sm:$0xf0] }
 0x2b8   :  { %v4822_v48 = vpack.c.bf16 %v1241_v4, %v1239_v6  ;;  %v3391_v6 = vld [vmem:[%s5099_s9 + $0x1d4] sm:$0xf]  ;;  %v2991_v4 = vld [vmem:[%s5099_s9 + $0x1ec] sm:$0xf0]  ;;  %v3353_v59 = vld [vmem:[%s5099_s9 + $0xa0] sm:$0xf0] }
 0x2b9   :  { %2092 = vmatpush.bf16.msra.mxu0 %v3158_v1  ;;  %2120 = vmatpush.bf16.msrb.mxu1 %v3162_v2  ;;  %v3018_v1 = vor.u32 %v3401_v53, %v3017_v51  ;;  %v3022_v2 = vor.u32 %v3398_v55, %v3019_v56  ;;  %v3360_v51 = vld [vmem:[%s5099_s9 + $0xd8] sm:$0xf0]  ;;  %v3054_v53 = vor.u32 %v3409_v47, %v3053_v46  ;;  %v3025_v55 = vld [vmem:[%s5099_s9 + $0x210] sm:$0xf]  ;;  %v3402_v56 = vld [vmem:[%s5099_s9 + $0x228] sm:$0xf0] }
 0x2ba   :  { %1973 = vmatmul.bf16.vlgmr.msra.gmra.mxu3 %v4822_v48  ;;  %2001 = vmatmul.bf16.vlgmr.msra.gmra.mxu2 %v4822_v48  ;;  %v3026_v61 = vor.u32 %v3402_v56, %v3025_v55 }
 0x2bb   :  { %2077 = vmatpush.bf16.msra.mxu3 %v2962_v54  ;;  %2105 = vmatpush.bf16.msra.mxu2 %v2966_v37  ;;  %v3193_v54 = vld [vmem:[%s5099_s9 + $0x360] sm:$0xf]  ;;  %v3444_v37 = vld [vmem:[%s5099_s9 + $0x378] sm:$0xf0] }
 0x2bc   :  { %v3194_v13 = vor.u32 %v3444_v37, %v3193_v54 }
 0x2bd   :  { %2093 = vmatpush.bf16.msra.mxu0 %v3130_v11  ;;  %2121 = vmatpush.bf16.msrb.mxu1 %v3134_v12  ;;  %v2990_v11 = vor.u32 %v3394_v5, %v2989_v3  ;;  %v2994_v12 = vor.u32 %v3391_v6, %v2991_v4  ;;  %v3346_v3 = vld [vmem:[%s5099_s9 + $0x68] sm:$0xf0]  ;;  %v2998_v5 = vor.u32 %v3395_v0, %v2997_v62  ;;  %v2773_v4 = vld [vmem:[%s5099_s9 + $0x18] sm:$0xf]  ;;  %v1381_v0 = vperm.slane %v5076_v63, 6 }
 0x2bf   :  { %2078 = vmatpush.bf16.msra.mxu3 %v2934_v16  ;;  %2106 = vmatpush.bf16.msra.mxu2 %v2938_v17  ;;  %v3437_v16 = vld [vmem:[%s5099_s9 + $0x340] sm:$0xf0]  ;;  %v2765_v17 = vld [vmem:[%s5099_s9 + $0x10] sm:$0xf] }
 0x2c0   :  { %v2766_v24 = vor.u32 %v3338_v18, %v2765_v17 }
 0x2c1   :  { %2094 = vmatpush.bf16.msra.mxu0 %v3102_v22  ;;  %2122 = vmatpush.bf16.msrb.mxu1 %v3106_v23  ;;  %v3388_v22 = vld [vmem:[%s5099_s9 + $0x1b8] sm:$0xf0]  ;;  %v3166_v23 = vor.u32 %v3437_v16, %v3165_v15 }
 0x2c3   :  { %2079 = vmatpush.bf16.msra.mxu3 %v2906_v28  ;;  %2107 = vmatpush.bf16.msra.mxu2 %v2910_v29  ;;  %v2970_v28 = vor.u32 %v3388_v22, %v2969_v21  ;;  %v2941_v29 = vld [vmem:[%s5099_s9 + $0x168] sm:$0xf] }
 0x2c4   :  { %2043 = vmatmul.bf16.vlgmr.msrb.gmra.mxu0 %v4782_v52  ;;  %2071 = vmatmul.bf16.vlgmr.msra.gmra.mxu1 %v4782_v52 }
 0x2c5   :  { %2095 = vmatpush.bf16.msra.mxu0 %v3074_v34  ;;  %2123 = vmatpush.bf16.msrb.mxu1 %v3078_v35  ;;  %v2942_v34 = vor.u32 %v3381_v30, %v2941_v29  ;;  %v2913_v35 = vld [vmem:[%s5099_s9 + $0x130] sm:$0xf] }
 0x2c7   :  { %2080 = vmatpush.bf16.msra.mxu3 %v2878_v41  ;;  %2108 = vmatpush.bf16.msra.mxu2 %v2882_v42  ;;  %v2914_v41 = vor.u32 %v3374_v36, %v2913_v35  ;;  %v2885_v42 = vld [vmem:[%s5099_s9 + $0xf8] sm:$0xf] }
 0x2c9   :  { %2096 = vmatpush.bf16.msra.mxu0 %v3046_v49  ;;  %2124 = vmatpush.bf16.msrb.mxu1 %v3050_v50  ;;  %v2886_v49 = vor.u32 %v3367_v43, %v2885_v42  ;;  %v2857_v50 = vld [vmem:[%s5099_s9 + $0xc0] sm:$0xf] }
 0x2ca   :  { %2029 = vmatmul.bf16.vlgmr.msrb.gmra.mxu3 %v4822_v48  ;;  %2057 = vmatmul.bf16.vlgmr.msrb.gmra.mxu2 %v4822_v48 }
 0x2cb   :  { %2081 = vmatpush.bf16.msra.mxu3 %v2850_v57  ;;  %2109 = vmatpush.bf16.msra.mxu2 %v2854_v58  ;;  %v2858_v57 = vor.u32 %v3360_v51, %v2857_v50  ;;  %v2829_v58 = vld [vmem:[%s5099_s9 + $0x88] sm:$0xf] }
 0x2cd   :  { %2097 = vmatpush.bf16.msra.mxu0 %v3018_v1  ;;  %2125 = vmatpush.bf16.msrb.mxu1 %v3022_v2  ;;  %v2830_v1 = vor.u32 %v3353_v59, %v2829_v58  ;;  %v2801_v2 = vld [vmem:[%s5099_s9 + $0x50] sm:$0xf] }
 0x2ce   :  { %v2802_v6 = vor.u32 %v3346_v3, %v2801_v2 }
 0x2cf   :  { %2082 = vmatpush.bf16.msra.mxu3 %v2822_v7  ;;  %2110 = vmatpush.bf16.msra.mxu2 %v2826_v8  ;;  %v3339_v7 = vld [vmem:[%s5099_s9 + $0x30] sm:$0xf0]  ;;  %s3476_s9 = smov [#allocation2]  }
 0x2d0   :  { %v2774_v8 = vor.u32 %v3339_v7, %v2773_v4  ;;  %s2179_s10 = sshll.u32 %s3476_s9, 4  ;;  %s2180_s10 = int_to_ptr.vmem [resolvable:$true] %s2179_s10 }
 0x2d1   :  { %2098 = vmatpush.bf16.msra.mxu0 %v2990_v11  ;;  %2126 = vmatpush.bf16.msrb.mxu1 %v2994_v12 }
 0x2d3   :  { %2083 = vmatpush.bf16.msra.mxu3 %v2794_v9  ;;  %2111 = vmatpush.bf16.msra.mxu2 %v2798_v14 }
 0x2d4   :  { %2099 = vmatmul.bf16.vlgmr.msra.gmra.mxu0 %v4782_v52  ;;  %2127 = vmatmul.bf16.vlgmr.msrb.gmra.mxu1 %v4782_v52 }
 0x2d5   :  { %2147 = vmatpush.bf16.msrb.mxu0 %v3194_v13 }
 0x2d7   :  { %2084 = vmatpush.bf16.msra.mxu3 %v2766_v24  ;;  %2112 = vmatpush.bf16.msra.mxu2 %v2770_v25  ;;  %v1378_v24 = vperm.slane %v5076_v63, 3 }
 0x2d9   :  { %2148 = vmatpush.bf16.msrb.mxu0 %v3166_v23  ;;  %v1377_v23 = vperm.slane %v5076_v63, 2 }
 0x2da   :  { %2085 = vmatmul.bf16.vlgmr.msra.gmra.mxu3 %v4822_v48  ;;  %2113 = vmatmul.bf16.vlgmr.msra.gmra.mxu2 %v4822_v48 }
 0x2db   :  { %2133 = vmatpush.bf16.msrb.mxu3 %v2970_v28 }
 0x2dd   :  { %2149 = vmatpush.bf16.msrb.mxu0 %v3138_v31 }
 0x2df   :  { %2134 = vmatpush.bf16.msrb.mxu3 %v2942_v34 }
 0x2e1   :  { %2150 = vmatpush.bf16.msrb.mxu0 %v3110_v38 }
 0x2e3   :  { %2135 = vmatpush.bf16.msrb.mxu3 %v2914_v41  ;;  %v1380_v41 = vperm.slane %v5076_v63, 5 }
 0x2e5   :  { %2151 = vmatpush.bf16.msrb.mxu0 %v3082_v45 }
 0x2e7   :  { %2136 = vmatpush.bf16.msrb.mxu3 %v2886_v49 }
 0x2e9   :  { %2152 = vmatpush.bf16.msrb.mxu0 %v3054_v53 }
 0x2eb   :  { %2137 = vmatpush.bf16.msrb.mxu3 %v2858_v57 }
 0x2ed   :  { %2153 = vmatpush.bf16.msrb.mxu0 %v3026_v61 }
 0x2ef   :  { %2138 = vmatpush.bf16.msrb.mxu3 %v2830_v1 }
 0x2f1   :  { %2154 = vmatpush.bf16.msrb.mxu0 %v2998_v5 }
 0x2f3   :  { %2139 = vmatpush.bf16.msrb.mxu3 %v2802_v6 }
 0x2f4   :  { %2155 = vmatmul.bf16.vlgmr.msrb.gmra.mxu0 %v4782_v52 }
 0x2f7   :  { %2140 = vmatpush.bf16.msrb.mxu3 %v2774_v8 }
 0x2fa   :  { %2141 = vmatmul.bf16.vlgmr.msrb.gmra.mxu3 %v4822_v48 }
 0x331   :  { %v1988_v54 = vpop.f32.mrf.mxu0  ;;  %v2016_v37 = vpop.f32.mrf.mxu1 }
 0x339   :  { %v1990_v9 = vpop.f32.mrf.mxu0  ;;  %v2018_v52 = vpop.f32.mrf.mxu1 }
 0x33d   :  { %v1974_v10 = vpop.f32.mrf.mxu3  ;;  %v2002_v11 = vpop.f32.mrf.mxu2 }
 0x33e   :  { %v1975_v12 = vadd.f32 %v1974_v10, %v1375_v44  ;;  %v2003_v13 = vadd.f32 %v2002_v11, %v1376_v60 }
 0x340   :  { %v1989_v14 = vadd.f32 %v1988_v54, %v1975_v12  ;;  %v2017_v15 = vadd.f32 %v2016_v37, %v2003_v13 }
 0x341   :  { %v2044_v21 = vpop.f32.mrf.mxu0  ;;  %v2072_v22 = vpop.f32.mrf.mxu1 }
 0x342   :  { %2161 = vst [vmem:[#allocation2] sm:$0xff] %v1989_v14 }
 0x343   :  { %2162 = vst [vmem:[#allocation2 + $0x8] sm:$0xff] %v2017_v15 }
 0x345   :  { %v1976_v48 = vpop.f32.mrf.mxu3  ;;  %v2004_v16 = vpop.f32.mrf.mxu2 }
 0x346   :  { %v1977_v17 = vadd.f32 %v1976_v48, %v1375_v44  ;;  %v2005_v18 = vadd.f32 %v2004_v16, %v1376_v60 }
 0x348   :  { %v1991_v19 = vadd.f32 %v1990_v9, %v1977_v17  ;;  %v2019_v20 = vadd.f32 %v2018_v52, %v2005_v18 }
 0x349   :  { %v2046_v31 = vpop.f32.mrf.mxu0  ;;  %v2074_v32 = vpop.f32.mrf.mxu1 }
 0x34a   :  { %2168 = vst [vmem:[#allocation2 + $0x38] sm:$0xff] %v1991_v19 }
 0x34b   :  { %2169 = vst [vmem:[#allocation2 + $0x40] sm:$0xff] %v2019_v20 }
 0x34d   :  { %v2030_v25 = vpop.f32.mrf.mxu3  ;;  %v2058_v26 = vpop.f32.mrf.mxu2 }
 0x34e   :  { %v2031_v27 = vadd.f32 %v2030_v25, %v1377_v23  ;;  %v2059_v28 = vadd.f32 %v2058_v26, %v1378_v24 }
 0x350   :  { %v2045_v29 = vadd.f32 %v2044_v21, %v2031_v27  ;;  %v2073_v30 = vadd.f32 %v2072_v22, %v2059_v28 }
 0x351   :  { %v2100_v42 = vpop.f32.mrf.mxu0  ;;  %v2128_v45 = vpop.f32.mrf.mxu1 }
 0x352   :  { %2163 = vst [vmem:[#allocation2 + $0x10] sm:$0xff] %v2045_v29 }
 0x353   :  { %2164 = vst [vmem:[#allocation2 + $0x18] sm:$0xff] %v2073_v30 }
 0x355   :  { %v2032_v33 = vpop.f32.mrf.mxu3  ;;  %v2060_v34 = vpop.f32.mrf.mxu2 }
 0x356   :  { %v2033_v35 = vadd.f32 %v2032_v33, %v1377_v23  ;;  %v2061_v36 = vadd.f32 %v2060_v34, %v1378_v24 }
 0x358   :  { %v2047_v38 = vadd.f32 %v2046_v31, %v2033_v35  ;;  %v2075_v39 = vadd.f32 %v2074_v32, %v2061_v36 }
 0x359   :  { %v2102_v57 = vpop.f32.mrf.mxu0  ;;  %v2130_v59 = vpop.f32.mrf.mxu1 }
 0x35a   :  { %2170 = vst [vmem:[#allocation2 + $0x48] sm:$0xff] %v2047_v38 }
 0x35b   :  { %2171 = vst [vmem:[#allocation2 + $0x50] sm:$0xff] %v2075_v39 }
 0x35d   :  { %v2086_v43 = vpop.f32.mrf.mxu3  ;;  %v2114_v47 = vpop.f32.mrf.mxu2 }
 0x35e   :  { %v2087_v46 = vadd.f32 %v2086_v43, %v1379_v40  ;;  %v2115_v49 = vadd.f32 %v2114_v47, %v1380_v41 }
 0x360   :  { %v2101_v50 = vadd.f32 %v2100_v42, %v2087_v46  ;;  %v2129_v51 = vadd.f32 %v2128_v45, %v2115_v49 }
 0x362   :  { %2165 = vst [vmem:[#allocation2 + $0x20] sm:$0xff] %v2101_v50 }
 0x363   :  { %2166 = vst [vmem:[#allocation2 + $0x28] sm:$0xff] %v2129_v51 }
 0x365   :  { %v2088_v53 = vpop.f32.mrf.mxu3  ;;  %v2116_v56 = vpop.f32.mrf.mxu2 }
 0x366   :  { %v2089_v55 = vadd.f32 %v2088_v53, %v1379_v40  ;;  %v2117_v58 = vadd.f32 %v2116_v56, %v1380_v41 }
 0x368   :  { %v2103_v61 = vadd.f32 %v2102_v57, %v2089_v55  ;;  %v2131_v62 = vadd.f32 %v2130_v59, %v2117_v58 }
 0x36a   :  { %2172 = vst [vmem:[#allocation2 + $0x58] sm:$0xff] %v2103_v61 }
 0x36b   :  { %2173 = vst [vmem:[#allocation2 + $0x60] sm:$0xff] %v2131_v62 }
 0x371   :  { %v2156_v1 = vpop.f32.mrf.mxu0 }
 0x379   :  { %v2158_v7 = vpop.f32.mrf.mxu0 }
 0x37d   :  { %v2142_v2 = vpop.f32.mrf.mxu3 }
 0x37e   :  { %v2143_v3 = vadd.f32 %v2142_v2, %v1381_v0 }
 0x380   :  { %v2157_v5 = vadd.f32 %v2156_v1, %v2143_v3 }
 0x382   :  { %2167 = vst.msk [vmem:[#allocation2 + $0x30] sm:$0xff] %vm655_vm0, %v2157_v5 }
 0x385   :  { %v2144_v6 = vpop.f32.mrf.mxu3 }
 0x386   :  { %v2145_v4 = vadd.f32 %v2144_v6, %v1381_v0 }
 0x388   :  { %v2159_v8 = vadd.f32 %v2158_v7, %v2145_v4 }
 0x38a   :  { %2174 = vst.msk [vmem:[#allocation2 + $0x68] sm:$0xff] %vm655_vm0, %v2159_v8 }
 0x38b   :  { %2187 = dma.vmem_to_hbm [thread:$0]  %s2180_s10, 1792, %s2182_s25, [#allocation3], %s3477_s26, %s3477_s26, %s3478_s27  }
 0x38c   :  { %3474 = dma.done.wait [#allocation3], 1792  }
 0x38d   :  { %3475 = vsyncadd [#allocation3], 4294965504 }
 0x38e   :  { %2192 = vsyncpa [#allocation3], 1 }

</bundles_post_ra>
